<compile_context>
chip_gen: v7x
topology: tpu7x:2x2x1
jax: 0.10.0
libtpu: 0.0.40
codegen_flags: <defaults>
</compile_context>

<pallas_src>
import functools

import jax
import jax.numpy as jnp
from jax import lax
from jax.experimental import pallas as pl
from jax.experimental.pallas import tpu as pltpu


# --------------------------------------------------------------------------
# In-kernel helpers
# --------------------------------------------------------------------------
def _logits_tile(anchor_ref, contrast_ref, inv_temperature, scale_in_logits):
    """Raw (unshifted) logits a.c / T for a [TA, D] x [TN, D] tile pair."""
    a = anchor_ref[...]
    if not scale_in_logits:
        # f32 features: fold 1/T into the small [TA, D] tile (saves a [TA,TN] mul).
        a = a * jnp.asarray(inv_temperature, a.dtype)
    logits = lax.dot_general(a, contrast_ref[...], (((1,), (1,)), ((), ())),
                             preferred_element_type=jnp.float32)
    if scale_in_logits:
        # sub-f32 features: scale the f32 logits so 1/T is not quantized to bf16.
        logits = logits * jnp.float32(inv_temperature)
    return logits


def _init_accumulators(j, m_sc, l_sc, p_sc):
    @pl.when(j == 0)
    def _():
        m_sc[...] = jnp.full_like(m_sc, -jnp.inf)
        l_sc[...] = jnp.zeros_like(l_sc)
        p_sc[...] = jnp.zeros_like(p_sc)


def _online_update(logits, pos_logits, not_self, col_valid, m_sc, l_sc, p_sc):
    """Accumulate one streamed contrast chunk into the running row statistics."""
    if col_valid is not None:
        logits_for_max = jnp.where(col_valid, logits, -jnp.inf)
    else:
        logits_for_max = logits
    chunk_max = jnp.max(logits_for_max, axis=1, keepdims=True)      # [TA,1]
    m_new = jnp.maximum(m_sc[...], chunk_max)
    alpha = jnp.exp(m_sc[...] - m_new)                              # EUP; 0 on 1st chunk
    e = jnp.where(not_self, jnp.exp(logits - m_new), 0.0)           # [TA,TN]
    # NOTE: these two lane sums are MXU-offloadable (ones[TN,1] dot) if profiling
    # shows VALU/XLU saturation.
    l_sc[...] = l_sc[...] * alpha + jnp.sum(e, axis=1, keepdims=True)
    p_sc[...] = p_sc[...] + jnp.sum(pos_logits, axis=1, keepdims=True)
    m_sc[...] = m_new


def _finalize(j, row, pcnt_ref, out_ref, m_sc, l_sc, p_sc, loss_scale,
              num_valid_rows, rows_padded):
    @pl.when(j == pl.num_programs(1) - 1)
    def _():
        # NOTE: rows with zero positives give NaN, exactly like the torch module.
        mean_lpp = p_sc[...] / pcnt_ref[...] - m_sc[...] - jnp.log(l_sc[...])
        row_loss = loss_scale * mean_lpp                            # [TA,1] f32
        if rows_padded:
            row_loss = jnp.where(row < num_valid_rows, row_loss, 0.0)
        partial = jnp.sum(row_loss)
        out_ref[...] = jnp.broadcast_to(partial, out_ref.shape).astype(out_ref.dtype)


# --------------------------------------------------------------------------
# Kernel bodies
# --------------------------------------------------------------------------
def _supcon_labels_kernel(aid_ref, cid_ref, pcnt_ref, anchor_ref, contrast_ref,
                          out_ref, m_sc, l_sc, p_sc, *,
                          inv_temperature, loss_scale, scale_in_logits,
                          num_valid_rows, rows_padded,
                          num_valid_cols, cols_padded):
    ta = anchor_ref.shape[0]
    tn = contrast_ref.shape[0]
    i, j = pl.program_id(0), pl.program_id(1)
    # Broadcasting iotas: (TA,1) sublane x (1,TN) lane -> no [TA,TN] int32 arrays.
    row = i * ta + lax.broadcasted_iota(jnp.int32, (ta, 1), 0)
    col = j * tn + lax.broadcasted_iota(jnp.int32, (1, tn), 1)

    _init_accumulators(j, m_sc, l_sc, p_sc)

    logits = _logits_tile(anchor_ref, contrast_ref, inv_temperature, scale_in_logits)

    col_valid = (col < num_valid_cols) if cols_padded else None
    # Self exclusion assumes anchor row r <-> contrast row r, which holds for both
    # 'all' and 'one' modes under the torch view-major stacking.
    not_self = col != row
    if cols_padded:
        not_self = jnp.logical_and(not_self, col_valid)
    pos = jnp.logical_and(aid_ref[...] == cid_ref[...], not_self)   # boolean, no f32 mask
    pos_logits = jnp.where(pos, logits, 0.0)

    _online_update(logits, pos_logits, not_self, col_valid, m_sc, l_sc, p_sc)
    _finalize(j, row, pcnt_ref, out_ref, m_sc, l_sc, p_sc, loss_scale,
              num_valid_rows, rows_padded)


def _supcon_mask_kernel(mask_ref, pcnt_ref, anchor_ref, contrast_ref,
                        out_ref, m_sc, l_sc, p_sc, *,
                        inv_temperature, loss_scale, scale_in_logits,
                        num_valid_rows, rows_padded,
                        num_valid_cols, cols_padded):
    ta = anchor_ref.shape[0]
    tn = contrast_ref.shape[0]
    i, j = pl.program_id(0), pl.program_id(1)
    row = i * ta + lax.broadcasted_iota(jnp.int32, (ta, 1), 0)
    col = j * tn + lax.broadcasted_iota(jnp.int32, (1, tn), 1)

    _init_accumulators(j, m_sc, l_sc, p_sc)

    logits = _logits_tile(anchor_ref, contrast_ref, inv_temperature, scale_in_logits)

    col_valid = (col < num_valid_cols) if cols_padded else None
    not_self = col != row
    if cols_padded:
        not_self = jnp.logical_and(not_self, col_valid)
    # Arbitrary (possibly non-binary / asymmetric) float mask, self column zeroed.
    pos_logits = jnp.where(not_self, mask_ref[...], 0.0) * logits

    _online_update(logits, pos_logits, not_self, col_valid, m_sc, l_sc, p_sc)
    _finalize(j, row, pcnt_ref, out_ref, m_sc, l_sc, p_sc, loss_scale,
              num_valid_rows, rows_padded)


# --------------------------------------------------------------------------
# Tile / VMEM sizing
# --------------------------------------------------------------------------
def _round_up(x, m):
    return ((x + m - 1) // m) * m


def _round_down(x, m):
    return (x // m) * m


def _vmem_capacity_bytes():
    try:
        info = pltpu.get_tpu_info()
        cap = int(getattr(info, "vmem_capacity_bytes", 0))
        if cap > 0:
            return max(32 << 20, min(cap, 128 << 20))
    except Exception:
        pass
    return 64 << 20                    # conservative (v7x-sized) default


def _choose_tiles(a_rows, n_cols, d, feat_itemsize, has_mask,
                  tile_a=None, tile_n=None):
    vmem_cap = _vmem_capacity_bytes()
    if vmem_cap >= (100 << 20):        # v5e / v6e: 128 MiB VMEM per core
        inter_budget = 56 << 20
        vmem_cap_limit = 100 << 20
    else:                              # v7x (64 MiB) or unknown
        inter_budget = 20 << 20
        vmem_cap_limit = min(vmem_cap, 64 << 20)

    # dtype packing granule for the anchor (sublane) tile: f32->8, bf16->16, 8-bit->32
    granule = {4: 8, 2: 16, 1: 32}.get(int(feat_itemsize), 8)

    # ---- contrast (lane) tile ------------------------------------------------
    n_full = _round_up(max(n_cols, 1), 128)
    if tile_n is not None:
        tn = min(max(128, _round_up(int(tile_n), 128)), n_full)
    elif 2 * n_full * d * feat_itemsize <= inter_budget // 2:
        tn = n_full                    # whole contrast set stays VMEM-resident
    else:
        # stream ~2 MiB contrast chunks (flash-style online softmax over N)
        tn = _round_down(max((2 << 20) // max(d * feat_itemsize, 1), 128), 128)
        tn = max(128, min(tn, n_full))
    n_pad = _round_up(n_cols, tn)

    # ---- anchor (sublane) tile -----------------------------------------------
    per_row = (10 * tn * 4                       # live [*,TN] f32 intermediates
               + (2 * tn * 4 if has_mask else 0)  # streamed mask rows (x2 buffers)
               + 2 * d * feat_itemsize            # anchor rows (x2 buffers)
               + 5 * 128 * 4)                     # scratch + id/count rows
    if tile_a is not None:
        ta = max(granule, _round_down(int(tile_a), granule))
    else:
        ta = max(granule, min(1024, inter_budget // max(per_row, 1)))
        if ta >= 256:
            ta = _round_down(ta, 256)            # MXU-friendly multiples
        elif ta >= 128:
            ta = 128
        else:
            ta = _round_down(ta, granule)
    ta = min(ta, _round_up(a_rows, granule))
    # v7x megacore: keep >= 2 steps on the "parallel" anchor axis when A is large.
    if tile_a is None and a_rows >= 256 and _round_up(a_rows, ta) // ta < 2:
        ta = _round_up(-(-a_rows // 2), granule)
    a_pad = _round_up(a_rows, ta)
    return ta, a_pad, tn, n_pad, vmem_cap_limit


# --------------------------------------------------------------------------
# Wrapper
# --------------------------------------------------------------------------
def supcon_loss(features, labels=None, mask=None, *, temperature=0.07,
                contrast_mode='all', base_temperature=0.07,
                tile_a=None, tile_n=None):
    """Pallas TPU implementation of SupConLoss.forward (returns a scalar loss)."""
    if features.ndim < 3:
        raise ValueError('`features` needs to be [bsz, n_views, ...], '
                         'at least 3 dimensions are required')
    if features.ndim > 3:
        features = features.reshape(features.shape[0], features.shape[1], -1)
    bsz, n_views, dim = features.shape
    if labels is not None and mask is not None:
        raise ValueError('Cannot define both `labels` and `mask`')

    contrast_count = n_views
    # torch.cat(torch.unbind(features, dim=1), dim=0): view-major stacking.
    contrast_feature = jnp.transpose(features, (1, 0, 2)).reshape(bsz * n_views, dim)
    if contrast_mode == 'one':
        anchor_feature, anchor_count = features[:, 0], 1
    elif contrast_mode == 'all':
        anchor_feature, anchor_count = contrast_feature, contrast_count
    else:
        raise ValueError('Unknown mode: {}'.format(contrast_mode))

    a_rows = anchor_feature.shape[0]
    n_cols = contrast_feature.shape[0]
    d = dim
    feat_isz = jnp.dtype(features.dtype).itemsize

    ta, a_pad, tn, n_pad, vmem_cap_limit = _choose_tiles(
        a_rows, n_cols, d, feat_isz, mask is not None, tile_a, tile_n)
    grid = (a_pad // ta, n_pad // tn)

    anchor_p = jnp.pad(anchor_feature, ((0, a_pad - a_rows), (0, 0)))
    contrast_p = jnp.pad(contrast_feature, ((0, n_pad - n_cols), (0, 0)))

    feat_specs = [
        pl.BlockSpec((ta, d), lambda i, j: (i, 0)),   # anchor tile (pipelined over i)
        pl.BlockSpec((tn, d), lambda i, j: (j, 0)),   # contrast chunk (resident if 1 chunk)
    ]
    pcnt_spec = pl.BlockSpec((ta, 1), lambda i, j: (i, 0))
    out_spec = pl.BlockSpec((1, 8, 128), lambda i, j: (i, 0, 0))
    out_shape = jax.ShapeDtypeStruct((grid[0], 8, 128), jnp.float32)

    common = dict(
        inv_temperature=float(1.0 / temperature),
        loss_scale=float(-(temperature / base_temperature)),
        scale_in_logits=(jnp.dtype(features.dtype) != jnp.dtype(jnp.float32)),
        num_valid_rows=a_rows, rows_padded=(a_pad > a_rows),
        num_valid_cols=n_cols, cols_padded=(n_pad > n_cols))

    if mask is None:
        # Labels / SimCLR path: no [A, N] mask in HBM; a broadcasted int32 compare
        # inside the kernel plus precomputed per-anchor positive counts.
        if labels is None:
            base_ids = jnp.arange(bsz, dtype=jnp.int32)            # SimCLR: eye(bsz)
        else:
            labels = jnp.asarray(labels).reshape(-1)
            if labels.shape[0] != bsz:
                raise ValueError('Num of labels does not match num of features')
            base_ids = labels.astype(jnp.int32)
        per_sample = jnp.sum(base_ids[:, None] == base_ids[None, :], axis=1)
        counts = (per_sample * contrast_count - 1).astype(jnp.float32)
        cid = jnp.tile(base_ids, (contrast_count,))                # [N]
        if contrast_mode == 'all':
            aid, pcnt = cid, jnp.tile(counts, (contrast_count,))
        else:
            aid, pcnt = base_ids, counts
        aid = jnp.pad(aid, (0, a_pad - a_rows), constant_values=-1)
        cid = jnp.pad(cid, (0, n_pad - n_cols), constant_values=-1)
        pcnt = jnp.pad(pcnt, (0, a_pad - a_rows), constant_values=1.0)
        kernel = functools.partial(_supcon_labels_kernel, **common)
        in_specs = [pl.BlockSpec((ta, 1), lambda i, j: (i, 0)),
                    pl.BlockSpec((1, tn), lambda i, j: (0, j)),
                    pcnt_spec] + feat_specs
        args = (aid.reshape(a_pad, 1), cid.reshape(1, n_pad),
                pcnt.reshape(a_pad, 1), anchor_p, contrast_p)
        mask_bytes = 0
    else:
        # TODO(synk): a binary user mask could be streamed as int8/bf16 (4x less HBM
        # traffic); kept f32 to preserve arbitrary (possibly non-binary, asymmetric)
        # float masks exactly.
        tiled = jnp.tile(jnp.asarray(mask, jnp.float32),
                         (anchor_count, contrast_count))           # [A, N]
        diag = tiled[jnp.arange(a_rows), jnp.arange(a_rows)]
        pcnt = jnp.sum(tiled, axis=1) - diag                       # self excluded
        tiled = jnp.pad(tiled, ((0, a_pad - a_rows), (0, n_pad - n_cols)))
        pcnt = jnp.pad(pcnt, (0, a_pad - a_rows), constant_values=1.0)
        kernel = functools.partial(_supcon_mask_kernel, **common)
        in_specs = [pl.BlockSpec((ta, tn), lambda i, j: (i, j)),
                    pcnt_spec] + feat_specs
        args = (tiled, pcnt.reshape(a_pad, 1), anchor_p, contrast_p)
        mask_bytes = a_pad * n_pad * 4

    vmem_est = (10 * ta * tn * 4                      # f32 [TA,TN] intermediates
                + 2 * (ta + tn) * d * feat_isz        # feature tiles (x2 buffers)
                + 4 * ta * 128 * 4 + 2 * 8 * tn * 4   # id / count blocks (lane-padded)
                + 3 * ta * 128 * 4                    # online-softmax scratch
                + 2 * 8 * 128 * 4)                    # output blocks
    if mask is not None:
        vmem_est += 2 * ta * tn * 4
    vmem_limit = int(min(max(vmem_est + (4 << 20), 16 << 20), vmem_cap_limit))

    compiler_params = pltpu.CompilerParams(
        dimension_semantics=("parallel", "arbitrary"),
        vmem_limit_bytes=vmem_limit)
    cost = pl.CostEstimate(
        flops=2 * a_pad * n_pad * d + 8 * a_pad * n_pad,
        transcendentals=a_pad * n_pad,
        bytes_accessed=(a_pad + n_pad) * d * feat_isz + mask_bytes
                       + (2 * a_pad + n_pad) * 4 + grid[0] * 8 * 128 * 4)

    partials = pl.pallas_call(
        kernel,
        grid=grid,
        in_specs=in_specs,
        out_specs=out_spec,
        out_shape=out_shape,
        scratch_shapes=[pltpu.VMEM((ta, 1), jnp.float32)] * 3,     # m, l, p
        compiler_params=compiler_params,
        cost_estimate=cost,
    )(*args)

    # Per-tile partial sums -> mean over all A anchors
    # (== loss.view(anchor_count, batch_size).mean() in the torch module).
    return jnp.sum(partials[:, 0, 0]) / a_rows


# --------------------------------------------------------------------------
# Pure-JAX reference (mirrors the torch module) for verification
# --------------------------------------------------------------------------
def _supcon_loss_ref(features, labels=None, mask=None, *, temperature=0.07,
                     contrast_mode='all', base_temperature=0.07):
    bsz, n_views, dim = features.shape
    feats = features.astype(jnp.float32)
    if labels is None and mask is None:
        mask = jnp.eye(bsz, dtype=jnp.float32)
    elif labels is not None:
        labels = jnp.asarray(labels).reshape(-1, 1)
        mask = (labels == labels.T).astype(jnp.float32)
    else:
        mask = jnp.asarray(mask, jnp.float32)
    contrast_count = n_views
    contrast_feature = jnp.transpose(feats, (1, 0, 2)).reshape(bsz * n_views, dim)
    if contrast_mode == 'one':
        anchor_feature, anchor_count = feats[:, 0], 1
    else:
        anchor_feature, anchor_count = contrast_feature, contrast_count
    adc = (anchor_feature @ contrast_feature.T) / temperature
    logits = adc - jnp.max(adc, axis=1, keepdims=True)
    mask = jnp.tile(mask, (anchor_count, contrast_count))
    a_rows = anchor_feature.shape[0]
    logits_mask = jnp.ones_like(mask).at[
        jnp.arange(a_rows), jnp.arange(a_rows)].set(0.0)
    mask = mask * logits_mask
    exp_logits = jnp.exp(logits) * logits_mask
    log_prob = logits - jnp.log(exp_logits.sum(1, keepdims=True))
    mean_log_prob_pos = (mask * log_prob).sum(1) / mask.sum(1)
    loss = -(temperature / base_temperature) * mean_log_prob_pos
    return loss.reshape(anchor_count, bsz).mean()


# --------------------------------------------------------------------------
if __name__ == "__main__":
    key = jax.random.PRNGKey(0)
    kf, kl, km = jax.random.split(key, 3)

    bsz, n_views, dim = 64, 2, 32        # A = N = 128 (lane-aligned main case)
    features = jax.random.normal(kf, (bsz, n_views, dim), dtype=jnp.float32)
    features = features / jnp.linalg.norm(features, axis=-1, keepdims=True)
    labels = jax.random.randint(kl, (bsz,), 0, 10)

    checks = []

    # 1) supervised, 'all' mode (single anchor tile, resident contrast)
    want = _supcon_loss_ref(features, labels=labels)
    checks.append(("labels/all", supcon_loss(features, labels=labels), want))

    # 2) same, forced multi-tile anchor grid (tests global row index + partials)
    checks.append(("labels/all/tiled-rows",
                   supcon_loss(features, labels=labels, tile_a=32), want))

    # 3) SimCLR (labels=None, mask=None)
    checks.append(("simclr", supcon_loss(features), _supcon_loss_ref(features)))

    # 4) contrast_mode='one'
    checks.append(("labels/one",
                   supcon_loss(features, labels=labels, contrast_mode='one'),
                   _supcon_loss_ref(features, labels=labels, contrast_mode='one')))

    # 5) forced contrast chunking (flash-style online accumulation) + row/col padding
    bsz3 = 72                             # A = N = 144 -> 3 anchor tiles x 2 chunks
    f3 = jax.random.normal(km, (bsz3, n_views, dim), dtype=jnp.float32)
    f3 = f3 / jnp.linalg.norm(f3, axis=-1, keepdims=True)
    lab3 = jax.random.randint(jax.random.PRNGKey(2), (bsz3,), 0, 5)
    checks.append(("labels/all/chunked-cols",
                   supcon_loss(f3, labels=lab3, tile_a=64, tile_n=128),
                   _supcon_loss_ref(f3, labels=lab3)))

    # 6) explicit mask path with non-(8,128)-aligned shapes (padding/masking path)
    bsz2, nv2, d2 = 10, 2, 24
    f2 = jax.random.normal(jax.random.PRNGKey(3), (bsz2, nv2, d2), dtype=jnp.float32)
    f2 = f2 / jnp.linalg.norm(f2, axis=-1, keepdims=True)
    lab2 = jax.random.randint(jax.random.PRNGKey(1), (bsz2,), 0, 3)
    m2 = (lab2[:, None] == lab2[None, :]).astype(jnp.float32)
    checks.append(("mask/unaligned", supcon_loss(f2, mask=m2),
                   _supcon_loss_ref(f2, mask=m2)))

    for name, got, want_v in checks:
        got = jax.block_until_ready(got)
        assert jnp.allclose(got, want_v, rtol=3e-4, atol=3e-4), \
            (name, float(got), float(want_v))

    # bf16 fast path: features stay bf16 into the MXU (f32 accumulation); the 1/T
    # scale is applied to the f32 logits so it is not quantized to bf16.
    got_bf16 = jax.block_until_ready(
        supcon_loss(features.astype(jnp.bfloat16), labels=labels))
    assert bool(jnp.isfinite(got_bf16))
    assert abs(float(got_bf16) - float(want)) <= 0.1 * abs(float(want)) + 0.05

    print("KERNEL_OK")
</pallas_src>

<mosaic_0001>
module attributes {stable_mosaic.version = 11 : i64} {
  func.func @_supcon_labels_kernel(%arg0: i32, %arg1: i32, %arg2: memref<128x1xi32, #tpu.memory_space<vmem>>, %arg3: memref<1x128xi32, #tpu.memory_space<vmem>>, %arg4: memref<128x1xf32, #tpu.memory_space<vmem>>, %arg5: memref<128x32xf32, #tpu.memory_space<vmem>>, %arg6: memref<128x32xf32, #tpu.memory_space<vmem>>, %arg7: memref<1x8x128xf32, #tpu.memory_space<vmem>>, %arg8: memref<128x1xf32, #tpu.memory_space<vmem>>, %arg9: memref<128x1xf32, #tpu.memory_space<vmem>>, %arg10: memref<128x1xf32, #tpu.memory_space<vmem>>) attributes {dimension_semantics = [#tpu.dimension_semantics<parallel>, #tpu.dimension_semantics<arbitrary>], iteration_bounds = array<i64: 1, 1>, scalar_prefetch = 0 : i64, scratch_operands = 3 : i64, tpu.core_type = #tpu.core_type<tc>, window_params = [{transform_indices = @transform_0, window_bounds = array<i64: 128, 1>}, {transform_indices = @transform_1, window_bounds = array<i64: 1, 128>}, {transform_indices = @transform_2, window_bounds = array<i64: 128, 1>}, {transform_indices = @transform_3, window_bounds = array<i64: 128, 32>}, {transform_indices = @transform_4, window_bounds = array<i64: 128, 32>}, {transform_indices = @transform_5, window_bounds = array<i64: 1, 8, 128>}]} {
    %c128_i32 = arith.constant 128 : i32
    %0 = arith.muli %arg0, %c128_i32 : i32
    %1 = tpu.iota {dimensions = array<i32: 0>} : vector<128x1xi32>
    %2 = vector.broadcast %0 : i32 to vector<128x1xi32>
    %3 = arith.addi %2, %1 : vector<128x1xi32>
    %c128_i32_0 = arith.constant 128 : i32
    %4 = arith.muli %arg1, %c128_i32_0 : i32
    %5 = tpu.iota {dimensions = array<i32: 1>} : vector<1x128xi32>
    %6 = vector.broadcast %4 : i32 to vector<1x128xi32>
    %7 = arith.addi %6, %5 : vector<1x128xi32>
    %c0_i32 = arith.constant 0 : i32
    %8 = arith.cmpi eq, %arg1, %c0_i32 : i32
    %9 = arith.extui %8 : i1 to i32
    %c0_i32_1 = arith.constant 0 : i32
    %10 = arith.cmpi ne, %9, %c0_i32_1 : i32
    scf.if %10 {
      %cst_31 = arith.constant 0xFF800000 : f32
      %54 = vector.broadcast %cst_31 : f32 to vector<128x1xf32>
      %c0_32 = arith.constant 0 : index
      %c0_33 = arith.constant 0 : index
      %55 = vector.load %arg8[%c0_32, %c0_33] : memref<128x1xf32, #tpu.memory_space<vmem>>, vector<128x1xf32>
      tpu.vector_store %arg8[%c0_32, %c0_33], %54 {strides = array<i32>} : memref<128x1xf32, #tpu.memory_space<vmem>>, vector<128x1xf32>,
      %cst_34 = arith.constant 0.000000e+00 : f32
      %56 = vector.broadcast %cst_34 : f32 to vector<128x1xf32>
      %c0_35 = arith.constant 0 : index
      %c0_36 = arith.constant 0 : index
      %57 = vector.load %arg9[%c0_35, %c0_36] : memref<128x1xf32, #tpu.memory_space<vmem>>, vector<128x1xf32>
      tpu.vector_store %arg9[%c0_35, %c0_36], %56 {strides = array<i32>} : memref<128x1xf32, #tpu.memory_space<vmem>>, vector<128x1xf32>,
      %cst_37 = arith.constant 0.000000e+00 : f32
      %58 = vector.broadcast %cst_37 : f32 to vector<128x1xf32>
      %c0_38 = arith.constant 0 : index
      %c0_39 = arith.constant 0 : index
      %59 = vector.load %arg10[%c0_38, %c0_39] : memref<128x1xf32, #tpu.memory_space<vmem>>, vector<128x1xf32>
      tpu.vector_store %arg10[%c0_38, %c0_39], %58 {strides = array<i32>} : memref<128x1xf32, #tpu.memory_space<vmem>>, vector<128x1xf32>,
    } else {
    }
    %c0 = arith.constant 0 : index
    %c0_2 = arith.constant 0 : index
    %11 = vector.load %arg5[%c0, %c0_2] : memref<128x32xf32, #tpu.memory_space<vmem>>, vector<128x32xf32>
    %cst = arith.constant 14.2857141 : f32
    %12 = vector.broadcast %cst : f32 to vector<128x32xf32>
    %13 = arith.mulf %11, %12 : vector<128x32xf32>
    %c0_3 = arith.constant 0 : index
    %c0_4 = arith.constant 0 : index
    %14 = vector.load %arg6[%c0_3, %c0_4] : memref<128x32xf32, #tpu.memory_space<vmem>>, vector<128x32xf32>
    %cst_5 = arith.constant dense<0.000000e+00> : vector<128x128xf32>
    %15 = tpu.matmul %13, %14, %cst_5 {dimension_numbers = #tpu.dot_dimension_numbers<[1], [1], [0], [0], [0, 0, 1, 0], [], []>} : vector<128x32xf32>, vector<128x32xf32>, vector<128x128xf32> -> vector<128x128xf32>
    %16 = vector.broadcast %7 : vector<1x128xi32> to vector<128x128xi32>
    %17 = vector.broadcast %3 : vector<128x1xi32> to vector<128x128xi32>
    %18 = arith.cmpi ne, %16, %17 : vector<128x128xi32>
    %c0_6 = arith.constant 0 : index
    %c0_7 = arith.constant 0 : index
    %19 = vector.load %arg2[%c0_6, %c0_7] : memref<128x1xi32, #tpu.memory_space<vmem>>, vector<128x1xi32>
    %c0_8 = arith.constant 0 : index
    %c0_9 = arith.constant 0 : index
    %20 = vector.load %arg3[%c0_8, %c0_9] : memref<1x128xi32, #tpu.memory_space<vmem>>, vector<1x128xi32>
    %21 = vector.broadcast %19 : vector<128x1xi32> to vector<128x128xi32>
    %22 = vector.broadcast %20 : vector<1x128xi32> to vector<128x128xi32>
    %23 = arith.cmpi eq, %21, %22 : vector<128x128xi32>
    %24 = arith.andi %23, %18 : vector<128x128xi1>
    %cst_10 = arith.constant 0.000000e+00 : f32
    %25 = vector.broadcast %cst_10 : f32 to vector<128x128xf32>
    %26 = arith.select %24, %15, %25 : vector<128x128xi1>, vector<128x128xf32>
    %cst_11 = arith.constant dense<0xFF800000> : vector<128xf32>
    %27 = vector.multi_reduction <maximumf>, %15, %cst_11 [1] : vector<128x128xf32> to vector<128xf32>
    %28 = vector.shape_cast %27 : vector<128xf32> to vector<128x1xf32>
    %c0_12 = arith.constant 0 : index
    %c0_13 = arith.constant 0 : index
    %29 = vector.load %arg8[%c0_12, %c0_13] : memref<128x1xf32, #tpu.memory_space<vmem>>, vector<128x1xf32>
    %30 = arith.maximumf %29, %28 : vector<128x1xf32>
    %c0_14 = arith.constant 0 : index
    %c0_15 = arith.constant 0 : index
    %31 = vector.load %arg8[%c0_14, %c0_15] : memref<128x1xf32, #tpu.memory_space<vmem>>, vector<128x1xf32>
    %32 = arith.subf %31, %30 : vector<128x1xf32>
    %33 = math.exp %32 : vector<128x1xf32>
    %34 = vector.broadcast %30 : vector<128x1xf32> to vector<128x128xf32>
    %35 = arith.subf %15, %34 : vector<128x128xf32>
    %36 = math.exp %35 : vector<128x128xf32>
    %cst_16 = arith.constant 0.000000e+00 : f32
    %37 = vector.broadcast %cst_16 : f32 to vector<128x128xf32>
    %38 = arith.select %18, %36, %37 : vector<128x128xi1>, vector<128x128xf32>
    %c0_17 = arith.constant 0 : index
    %c0_18 = arith.constant 0 : index
    %39 = vector.load %arg9[%c0_17, %c0_18] : memref<128x1xf32, #tpu.memory_space<vmem>>, vector<128x1xf32>
    %40 = arith.mulf %39, %33 : vector<128x1xf32>
    %cst_19 = arith.constant dense<0.000000e+00> : vector<128xf32>
    %41 = vector.multi_reduction <add>, %38, %cst_19 [1] : vector<128x128xf32> to vector<128xf32>
    %42 = vector.shape_cast %41 : vector<128xf32> to vector<128x1xf32>
    %43 = arith.addf %40, %42 : vector<128x1xf32>
    %c0_20 = arith.constant 0 : index
    %c0_21 = arith.constant 0 : index
    %44 = vector.load %arg9[%c0_20, %c0_21] : memref<128x1xf32, #tpu.memory_space<vmem>>, vector<128x1xf32>
    tpu.vector_store %arg9[%c0_20, %c0_21], %43 {strides = array<i32>} : memref<128x1xf32, #tpu.memory_space<vmem>>, vector<128x1xf32>,
    %c0_22 = arith.constant 0 : index
    %c0_23 = arith.constant 0 : index
    %45 = vector.load %arg10[%c0_22, %c0_23] : memref<128x1xf32, #tpu.memory_space<vmem>>, vector<128x1xf32>
    %cst_24 = arith.constant dense<0.000000e+00> : vector<128xf32>
    %46 = vector.multi_reduction <add>, %26, %cst_24 [1] : vector<128x128xf32> to vector<128xf32>
    %47 = vector.shape_cast %46 : vector<128xf32> to vector<128x1xf32>
    %48 = arith.addf %45, %47 : vector<128x1xf32>
    %c0_25 = arith.constant 0 : index
    %c0_26 = arith.constant 0 : index
    %49 = vector.load %arg10[%c0_25, %c0_26] : memref<128x1xf32, #tpu.memory_space<vmem>>, vector<128x1xf32>
    tpu.vector_store %arg10[%c0_25, %c0_26], %48 {strides = array<i32>} : memref<128x1xf32, #tpu.memory_space<vmem>>, vector<128x1xf32>,
    %c0_27 = arith.constant 0 : index
    %c0_28 = arith.constant 0 : index
    %50 = vector.load %arg8[%c0_27, %c0_28] : memref<128x1xf32, #tpu.memory_space<vmem>>, vector<128x1xf32>
    tpu.vector_store %arg8[%c0_27, %c0_28], %30 {strides = array<i32>} : memref<128x1xf32, #tpu.memory_space<vmem>>, vector<128x1xf32>,
    %c0_i32_29 = arith.constant 0 : i32
    %51 = arith.cmpi eq, %arg1, %c0_i32_29 : i32
    %52 = arith.extui %51 : i1 to i32
    %c0_i32_30 = arith.constant 0 : i32
    %53 = arith.cmpi ne, %52, %c0_i32_30 : i32
    scf.if %53 {
      %c0_31 = arith.constant 0 : index
      %c0_32 = arith.constant 0 : index
      %54 = vector.load %arg10[%c0_31, %c0_32] : memref<128x1xf32, #tpu.memory_space<vmem>>, vector<128x1xf32>
      %c0_33 = arith.constant 0 : index
      %c0_34 = arith.constant 0 : index
      %55 = vector.load %arg4[%c0_33, %c0_34] : memref<128x1xf32, #tpu.memory_space<vmem>>, vector<128x1xf32>
      %56 = arith.divf %54, %55 : vector<128x1xf32>
      %c0_35 = arith.constant 0 : index
      %c0_36 = arith.constant 0 : index
      %57 = vector.load %arg8[%c0_35, %c0_36] : memref<128x1xf32, #tpu.memory_space<vmem>>, vector<128x1xf32>
      %58 = arith.subf %56, %57 : vector<128x1xf32>
      %c0_37 = arith.constant 0 : index
      %c0_38 = arith.constant 0 : index
      %59 = vector.load %arg9[%c0_37, %c0_38] : memref<128x1xf32, #tpu.memory_space<vmem>>, vector<128x1xf32>
      %60 = math.log %59 : vector<128x1xf32>
      %61 = arith.subf %58, %60 : vector<128x1xf32>
      %cst_39 = arith.constant -1.000000e+00 : f32
      %62 = vector.broadcast %cst_39 : f32 to vector<128x1xf32>
      %63 = arith.mulf %62, %61 : vector<128x1xf32>
      %64 = vector.shape_cast %63 : vector<128x1xf32> to vector<1x128x1xf32>
      %cst_40 = arith.constant dense<0.000000e+00> : vector<1xf32>
      %65 = vector.multi_reduction <add>, %64, %cst_40 [1, 2] : vector<1x128x1xf32> to vector<1xf32>
      %66 = vector.shape_cast %65 : vector<1xf32> to vector<1x1x1xf32>
      %67 = vector.extract %66[0, 0, 0] : f32 from vector<1x1x1xf32>
      %68 = vector.broadcast %67 : f32 to vector<1x8x128xf32>
      %c0_41 = arith.constant 0 : index
      %c0_42 = arith.constant 0 : index
      %c0_43 = arith.constant 0 : index
      %69 = vector.load %arg7[%c0_41, %c0_42, %c0_43] : memref<1x8x128xf32, #tpu.memory_space<vmem>>, vector<1x8x128xf32>
      tpu.vector_store %arg7[%c0_41, %c0_42, %c0_43], %68 {strides = array<i32>} : memref<1x8x128xf32, #tpu.memory_space<vmem>>, vector<1x8x128xf32>,
    } else {
    }
    return
  }
  func.func @transform_0(%arg0: i32, %arg1: i32) -> (i32, i32) {
    %c0_i32 = arith.constant 0 : i32
    %c0_i32_0 = arith.constant 0 : i32
    return %arg0, %c0_i32 : i32, i32
  }
  func.func @transform_1(%arg0: i32, %arg1: i32) -> (i32, i32) {
    %c0_i32 = arith.constant 0 : i32
    %c0_i32_0 = arith.constant 0 : i32
    return %c0_i32, %arg1 : i32, i32
  }
  func.func @transform_2(%arg0: i32, %arg1: i32) -> (i32, i32) {
    %c0_i32 = arith.constant 0 : i32
    %c0_i32_0 = arith.constant 0 : i32
    return %arg0, %c0_i32 : i32, i32
  }
  func.func @transform_3(%arg0: i32, %arg1: i32) -> (i32, i32) {
    %c0_i32 = arith.constant 0 : i32
    %c0_i32_0 = arith.constant 0 : i32
    return %arg0, %c0_i32 : i32, i32
  }
  func.func @transform_4(%arg0: i32, %arg1: i32) -> (i32, i32) {
    %c0_i32 = arith.constant 0 : i32
    %c0_i32_0 = arith.constant 0 : i32
    return %arg1, %c0_i32 : i32, i32
  }
  func.func @transform_5(%arg0: i32, %arg1: i32) -> (i32, i32, i32) {
    %c0_i32 = arith.constant 0 : i32
    %c0_i32_0 = arith.constant 0 : i32
    %c0_i32_1 = arith.constant 0 : i32
    return %arg0, %c0_i32, %c0_i32_0 : i32, i32, i32
  }
}

</mosaic_0001>

<bundles_post_ra>
// kernel: tpu_custom_call.1
= control target key start
LH: loop header
LB: loop body
LE: loop exit
PB: predicated region body
PF: predicated region fallthrough
CT: control target
= control target key end

     0   :  { %vm162_vm0 = vcmask 261120   ;;  %v1566_v6 = vmov 0   ;;  %s2437_s0 = inlined_call_operand.vmem [shape: s32[128,1], index: 0, kind: input, shape index: {}]   ;;  %s2438_s1 = inlined_call_operand.vmem [shape: s32[1,128], index: 1, kind: input, shape index: {}]   ;;  %s2439_s2 = inlined_call_operand.vmem [shape: f32[128,1], index: 2, kind: input, shape index: {}]   ;;  %s2440_s3 = inlined_call_operand.vmem [shape: f32[128,32], index: 3, kind: input, shape index: {}]   ;;  %s2441_s4 = inlined_call_operand.vmem [shape: f32[128,32], index: 4, kind: input, shape index: {}]   ;;  %s2442_s5 = inlined_call_operand.hbm [shape: f32[1,8,128], index: 5, kind: output, shape index: {}]  }
   0x1   :  { %v146_v0 = vld [vmem:[%s2441_s4] sm:$0xff]  ;;  %v147_v1 = vld [vmem:[%s2441_s4 + $0x8] sm:$0xff]  ;;  %v148_v2 = vld [vmem:[%s2441_s4 + $0x10] sm:$0xff]  ;;  %1413 = vset.pattern.permute.xlu0 %v1566_v6  ;;  %1412 = vset.pattern.permute.xlu1 %v1566_v6 }
   0x2   :  { %v1342_v3 = vpack.c.bf16 %v147_v1, %v146_v0  ;;  %vm1611_vm1 = vmpackc.low %vm162_vm0, %vm162_vm0  ;;  %v149_v5 = vld [vmem:[%s2441_s4 + $0x18] sm:$0xff]  ;;  %v114_v8 = vld [vmem:[%s2440_s3] sm:$0xff] }
   0x3   :  { %v1348_v7 = vpack.c.bf16 %v149_v5, %v148_v2  ;;  %v150_v9 = vld [vmem:[%s2441_s4 + $0x20] sm:$0xff]  ;;  %v151_v10 = vld [vmem:[%s2441_s4 + $0x28] sm:$0xff]  ;;  %v130_v11 = vmul.f32 14.285714, %v114_v8  ;;  %v152_v15 = vld [vmem:[%s2441_s4 + $0x30] sm:$0xff] }
   0x4   :  { %1344 = vmatprep.subr.msk.bf16.mxu0 %vm1611_vm1, %v1342_v3  ;;  %1390 = vmatprep.subr.msk.bf16.mxu1 %vm1611_vm1, %v1342_v3  ;;  %v122_v12 = vld [vmem:[%s2440_s3 + $0x40] sm:$0xff]  ;;  %v1354_v14 = vpack.c.bf16 %v151_v10, %v150_v9  ;;  %v153_v16 = vld [vmem:[%s2441_s4 + $0x38] sm:$0xff]  ;;  %v421_v17 = vld [vmem:[%s2437_s0 + $0x8] sm:$0xff] }
   0x5   :  { %1347 = vmatpush3.bf16.xpose.msk.msra.mxu0 %vm1611_vm1, %v1342_v3  ;;  %1398 = vmatpush3.bf16.xpose.msk.msra.mxu1 %vm1611_vm1, %v1342_v3  ;;  %v138_v13 = vmul.f32 14.285714, %v122_v12  ;;  %v420_v18 = vld [vmem:[%s2437_s0] sm:$0xff]  ;;  %v1360_v19 = vpack.c.bf16 %v153_v16, %v152_v15 }
   0x6   :  { %1350 = vmatprep.subr.msk.bf16.mxu0 %vm1611_vm1, %v1348_v7  ;;  %1391 = vmatprep.subr.msk.bf16.mxu1 %vm1611_vm1, %v1348_v7 }
   0x7   :  { %1318 = vmatprep.mubr.msk.f32.mxu0 %vm162_vm0, %v130_v11  ;;  %1330 = vmatprep.mubr.msk.f32.mxu1 %vm162_vm0, %v138_v13 }
   0x8   :  { %441 = vperm.xlu0 %1413, %v421_v17   ;;  %438 = vperm.xlu1 %1412, %v420_v18  }
   0xd   :  { %1353 = vmatpush3.bf16.xpose.msk.msra.mxu0 %vm1611_vm1, %v1348_v7  ;;  %1399 = vmatpush3.bf16.xpose.msk.msra.mxu1 %vm1611_vm1, %v1348_v7 }
   0xe   :  { %1356 = vmatprep.subr.msk.bf16.mxu0 %vm1611_vm1, %v1354_v14  ;;  %1392 = vmatprep.subr.msk.bf16.mxu1 %vm1611_vm1, %v1354_v14 }
   0xf   :  { %10 = vsyncpa [#allocation6], 0  ;;  %v154_v20 = vld [vmem:[%s2441_s4 + $0x40] sm:$0xff]  ;;  %v155_v21 = vld [vmem:[%s2441_s4 + $0x48] sm:$0xff]  ;;  %vm65_vm2 = vcmask 7168   ;;  %v1567_v4 = vmov -inf  }
  0x10   :  { %v1366_v22 = vpack.c.bf16 %v155_v21, %v154_v20  ;;  %v156_v23 = vld [vmem:[%s2441_s4 + $0x50] sm:$0xff]  ;;  %v157_v24 = vld [vmem:[%s2441_s4 + $0x58] sm:$0xff]  ;;  %v158_v26 = vld [vmem:[%s2441_s4 + $0x60] sm:$0xff]  ;;  %75 = vst.msk [vmem:[#allocation2 + $0x48] sm:$0xff] %vm65_vm2, %v1567_v4  ;;  %v1568_v13 = vmov 0.0  }
  0x11   :  { %v1372_v25 = vpack.c.bf16 %v157_v24, %v156_v23  ;;  %v159_v27 = vld [vmem:[%s2441_s4 + $0x68] sm:$0xff]  ;;  %v160_v29 = vld [vmem:[%s2441_s4 + $0x70] sm:$0xff]  ;;  %v161_v30 = vld [vmem:[%s2441_s4 + $0x78] sm:$0xff]  ;;  %66 = vst.msk [vmem:[#allocation2] sm:$0xff] %vm65_vm2, %v1567_v4 }
  0x12   :  { %v1378_v28 = vpack.c.bf16 %v159_v27, %v158_v26  ;;  %v1384_v31 = vpack.c.bf16 %v161_v30, %v160_v29  ;;  %v115_v32 = vld [vmem:[%s2440_s3 + $0x8] sm:$0xff]  ;;  %v116_v34 = vld [vmem:[%s2440_s3 + $0x10] sm:$0xff]  ;;  %v117_v39 = vld [vmem:[%s2440_s3 + $0x18] sm:$0xff]  ;;  %67 = vst.msk [vmem:[#allocation2 + $0x8] sm:$0xff] %vm65_vm2, %v1567_v4 }
  0x13   :  { %v123_v33 = vld [vmem:[%s2440_s3 + $0x48] sm:$0xff]  ;;  %v124_v35 = vld [vmem:[%s2440_s3 + $0x50] sm:$0xff]  ;;  %v131_v36 = vmul.f32 14.285714, %v115_v32  ;;  %v132_v38 = vmul.f32 14.285714, %v116_v34 }
  0x14   :  { %v139_v37 = vmul.f32 14.285714, %v123_v33  ;;  %v140_v40 = vmul.f32 14.285714, %v124_v35  ;;  %v125_v41 = vld [vmem:[%s2440_s3 + $0x58] sm:$0xff]  ;;  %v118_v42 = vld [vmem:[%s2440_s3 + $0x20] sm:$0xff] }
  0x15   :  { %1359 = vmatpush3.bf16.xpose.msk.msra.mxu0 %vm1611_vm1, %v1354_v14  ;;  %1400 = vmatpush3.bf16.xpose.msk.msra.mxu1 %vm1611_vm1, %v1354_v14  ;;  %v126_v43 = vld [vmem:[%s2440_s3 + $0x60] sm:$0xff]  ;;  %v133_v44 = vmul.f32 14.285714, %v117_v39  ;;  %v141_v45 = vmul.f32 14.285714, %v125_v41  ;;  %v119_v47 = vld [vmem:[%s2440_s3 + $0x28] sm:$0xff] }
  0x16   :  { %1362 = vmatprep.subr.msk.bf16.mxu0 %vm1611_vm1, %v1360_v19  ;;  %1393 = vmatprep.subr.msk.bf16.mxu1 %vm1611_vm1, %v1360_v19  ;;  %v134_v46 = vmul.f32 14.285714, %v118_v42  ;;  %v142_v48 = vmul.f32 14.285714, %v126_v43  ;;  %v127_v49 = vld [vmem:[%s2440_s3 + $0x68] sm:$0xff]  ;;  %v120_v50 = vld [vmem:[%s2440_s3 + $0x30] sm:$0xff] }
  0x17   :  { %v128_v51 = vld [vmem:[%s2440_s3 + $0x70] sm:$0xff]  ;;  %v135_v52 = vmul.f32 14.285714, %v119_v47  ;;  %v143_v53 = vmul.f32 14.285714, %v127_v49  ;;  %v121_v55 = vld [vmem:[%s2440_s3 + $0x38] sm:$0xff] }
  0x18   :  { %v136_v54 = vmul.f32 14.285714, %v120_v50  ;;  %v144_v56 = vmul.f32 14.285714, %v128_v51  ;;  %v129_v57 = vld [vmem:[%s2440_s3 + $0x78] sm:$0xff]  ;;  %68 = vst.msk [vmem:[#allocation2 + $0x10] sm:$0xff] %vm65_vm2, %v1567_v4 }
  0x19   :  { %v137_v58 = vmul.f32 14.285714, %v121_v55  ;;  %v145_v59 = vmul.f32 14.285714, %v129_v57  ;;  %69 = vst.msk [vmem:[#allocation2 + $0x18] sm:$0xff] %vm65_vm2, %v1567_v4  ;;  %70 = vst.msk [vmem:[#allocation2 + $0x20] sm:$0xff] %vm65_vm2, %v1567_v4 }
  0x1a   :  { %71 = vst.msk [vmem:[#allocation2 + $0x28] sm:$0xff] %vm65_vm2, %v1567_v4  ;;  %72 = vst.msk [vmem:[#allocation2 + $0x30] sm:$0xff] %vm65_vm2, %v1567_v4  ;;  %v422_v14 = vld [vmem:[%s2437_s0 + $0x10] sm:$0xff]  ;;  %v1891_v17 = vld [vmem:[#allocation2 + $0x48] sm:$0xff] }
  0x1b   :  { %73 = vst.msk [vmem:[#allocation2 + $0x38] sm:$0xff] %vm65_vm2, %v1567_v4  ;;  %74 = vst.msk [vmem:[#allocation2 + $0x40] sm:$0xff] %vm65_vm2, %v1567_v4  ;;  %v1893_v18 = vld [vmem:[#allocation2 + $0x8] sm:$0xff]  ;;  %v1901_v23 = vld [vmem:[#allocation2] sm:$0xff] }
  0x1c   :  { %76 = vst.msk [vmem:[#allocation2 + $0x50] sm:$0xff] %vm65_vm2, %v1567_v4  ;;  %77 = vst.msk [vmem:[#allocation2 + $0x58] sm:$0xff] %vm65_vm2, %v1567_v4 }
  0x1d   :  { %1365 = vmatpush3.bf16.xpose.msk.msra.mxu0 %vm1611_vm1, %v1360_v19  ;;  %1401 = vmatpush3.bf16.xpose.msk.msra.mxu1 %vm1611_vm1, %v1360_v19  ;;  %78 = vst.msk [vmem:[#allocation2 + $0x60] sm:$0xff] %vm65_vm2, %v1567_v4  ;;  %79 = vst.msk [vmem:[#allocation2 + $0x68] sm:$0xff] %vm65_vm2, %v1567_v4 }
  0x1e   :  { %1368 = vmatprep.subr.msk.bf16.mxu0 %vm1611_vm1, %v1366_v22  ;;  %1394 = vmatprep.subr.msk.bf16.mxu1 %vm1611_vm1, %v1366_v22  ;;  %80 = vst.msk [vmem:[#allocation2 + $0x70] sm:$0xff] %vm65_vm2, %v1567_v4  ;;  %81 = vst.msk [vmem:[#allocation2 + $0x78] sm:$0xff] %vm65_vm2, %v1567_v4 }
  0x1f   :  { %98 = vst.msk [vmem:[#allocation4] sm:$0xff] %vm65_vm2, %v1568_v13  ;;  %82 = vst.msk [vmem:[#allocation3] sm:$0xff] %vm65_vm2, %v1568_v13 }
  0x20   :  { %83 = vst.msk [vmem:[#allocation3 + $0x8] sm:$0xff] %vm65_vm2, %v1568_v13  ;;  %84 = vst.msk [vmem:[#allocation3 + $0x10] sm:$0xff] %vm65_vm2, %v1568_v13  ;;  %v1903_v24 = vld [vmem:[#allocation2 + $0x18] sm:$0xff]  ;;  %v1965_v49 = vld [vmem:[#allocation2 + $0x20] sm:$0xff] }
  0x21   :  { %85 = vst.msk [vmem:[#allocation3 + $0x18] sm:$0xff] %vm65_vm2, %v1568_v13  ;;  %86 = vst.msk [vmem:[#allocation3 + $0x20] sm:$0xff] %vm65_vm2, %v1568_v13 }
  0x22   :  { %87 = vst.msk [vmem:[#allocation3 + $0x28] sm:$0xff] %vm65_vm2, %v1568_v13  ;;  %88 = vst.msk [vmem:[#allocation3 + $0x30] sm:$0xff] %vm65_vm2, %v1568_v13 }
  0x23   :  { %89 = vst.msk [vmem:[#allocation3 + $0x38] sm:$0xff] %vm65_vm2, %v1568_v13  ;;  %90 = vst.msk [vmem:[#allocation3 + $0x40] sm:$0xff] %vm65_vm2, %v1568_v13  ;;  %v1923_v32 = vld [vmem:[#allocation2 + $0x58] sm:$0xff]  ;;  %v1940_v39 = vld [vmem:[#allocation2 + $0x50] sm:$0xff] }
  0x24   :  { %91 = vst.msk [vmem:[#allocation3 + $0x48] sm:$0xff] %vm65_vm2, %v1568_v13  ;;  %92 = vst.msk [vmem:[#allocation3 + $0x50] sm:$0xff] %vm65_vm2, %v1568_v13  ;;  %v1985_v57 = vld [vmem:[#allocation2 + $0x68] sm:$0xff] }
  0x25   :  { %1371 = vmatpush3.bf16.xpose.msk.msra.mxu0 %vm1611_vm1, %v1366_v22  ;;  %1402 = vmatpush3.bf16.xpose.msk.msra.mxu1 %vm1611_vm1, %v1366_v22  ;;  %93 = vst.msk [vmem:[#allocation3 + $0x58] sm:$0xff] %vm65_vm2, %v1568_v13  ;;  %94 = vst.msk [vmem:[#allocation3 + $0x60] sm:$0xff] %vm65_vm2, %v1568_v13 }
  0x26   :  { %1374 = vmatprep.subr.msk.bf16.mxu0 %vm1611_vm1, %v1372_v25  ;;  %1395 = vmatprep.subr.msk.bf16.mxu1 %vm1611_vm1, %v1372_v25  ;;  %95 = vst.msk [vmem:[#allocation3 + $0x68] sm:$0xff] %vm65_vm2, %v1568_v13  ;;  %96 = vst.msk [vmem:[#allocation3 + $0x70] sm:$0xff] %vm65_vm2, %v1568_v13 }
  0x27   :  { %97 = vst.msk [vmem:[#allocation3 + $0x78] sm:$0xff] %vm65_vm2, %v1568_v13  ;;  %99 = vst.msk [vmem:[#allocation4 + $0x8] sm:$0xff] %vm65_vm2, %v1568_v13 }
  0x28   :  { %100 = vst.msk [vmem:[#allocation4 + $0x10] sm:$0xff] %vm65_vm2, %v1568_v13  ;;  %101 = vst.msk [vmem:[#allocation4 + $0x18] sm:$0xff] %vm65_vm2, %v1568_v13 }
  0x29   :  { %102 = vst.msk [vmem:[#allocation4 + $0x20] sm:$0xff] %vm65_vm2, %v1568_v13  ;;  %103 = vst.msk [vmem:[#allocation4 + $0x28] sm:$0xff] %vm65_vm2, %v1568_v13 }
  0x2a   :  { %104 = vst.msk [vmem:[#allocation4 + $0x30] sm:$0xff] %vm65_vm2, %v1568_v13  ;;  %105 = vst.msk [vmem:[#allocation4 + $0x38] sm:$0xff] %vm65_vm2, %v1568_v13 }
  0x2b   :  { %106 = vst.msk [vmem:[#allocation4 + $0x40] sm:$0xff] %vm65_vm2, %v1568_v13  ;;  %107 = vst.msk [vmem:[#allocation4 + $0x48] sm:$0xff] %vm65_vm2, %v1568_v13 }
  0x2c   :  { %108 = vst.msk [vmem:[#allocation4 + $0x50] sm:$0xff] %vm65_vm2, %v1568_v13  ;;  %109 = vst.msk [vmem:[#allocation4 + $0x58] sm:$0xff] %vm65_vm2, %v1568_v13 }
  0x2d   :  { %1377 = vmatpush3.bf16.xpose.msk.msra.mxu0 %vm1611_vm1, %v1372_v25  ;;  %1403 = vmatpush3.bf16.xpose.msk.msra.mxu1 %vm1611_vm1, %v1372_v25  ;;  %110 = vst.msk [vmem:[#allocation4 + $0x60] sm:$0xff] %vm65_vm2, %v1568_v13  ;;  %111 = vst.msk [vmem:[#allocation4 + $0x68] sm:$0xff] %vm65_vm2, %v1568_v13 }
  0x2e   :  { %1380 = vmatprep.subr.msk.bf16.mxu0 %vm1611_vm1, %v1378_v28  ;;  %1396 = vmatprep.subr.msk.bf16.mxu1 %vm1611_vm1, %v1378_v28  ;;  %112 = vst.msk [vmem:[#allocation4 + $0x70] sm:$0xff] %vm65_vm2, %v1568_v13  ;;  %113 = vst.msk [vmem:[#allocation4 + $0x78] sm:$0xff] %vm65_vm2, %v1568_v13 }
  0x35   :  { %1383 = vmatpush3.bf16.xpose.msk.msra.mxu0 %vm1611_vm1, %v1378_v28  ;;  %1404 = vmatpush3.bf16.xpose.msk.msra.mxu1 %vm1611_vm1, %v1378_v28 }
  0x36   :  { %1386 = vmatprep.subr.msk.bf16.mxu0 %vm1611_vm1, %v1384_v31  ;;  %1397 = vmatprep.subr.msk.bf16.mxu1 %vm1611_vm1, %v1384_v31 }
  0x3d   :  { %1389 = vmatpush3.bf16.xpose.msk.msra.mxu0 %vm1611_vm1, %v1384_v31  ;;  %1405 = vmatpush3.bf16.xpose.msk.msra.mxu1 %vm1611_vm1, %v1384_v31  ;;  %v1921_v31 = vld [vmem:[#allocation2 + $0x40] sm:$0xff] }
  0x44   :  { %1319 = vmatmul.mubr.msk.f32.vlgmr.msra.gmra.mrb[0].mxu0 %vm162_vm0, %v131_v36  ;;  %1331 = vmatmul.mubr.msk.f32.vlgmr.msra.gmra.mrb[0].mxu1 %vm162_vm0, %v139_v37 }
  0x45   :  { %1321 = vmatprep.mubr.msk.f32.mxu0 %vm162_vm0, %v132_v38  ;;  %1333 = vmatprep.mubr.msk.f32.mxu1 %vm162_vm0, %v140_v40  ;;  %v1942_v40 = vld [vmem:[#allocation2 + $0x10] sm:$0xff] }
  0x48   :  { %1322 = vmatmul.mubr.msk.f32.gmra.mrb[2].mxu0 %vm162_vm0, %v133_v44  ;;  %1334 = vmatmul.mubr.msk.f32.gmra.mrb[2].mxu1 %vm162_vm0, %v141_v45  ;;  %v423_v45 = vld [vmem:[%s2437_s0 + $0x18] sm:$0xff] }
  0x49   :  { %1324 = vmatprep.mubr.msk.f32.mxu0 %vm162_vm0, %v134_v46  ;;  %1336 = vmatprep.mubr.msk.f32.mxu1 %vm162_vm0, %v142_v48  ;;  %v1963_v48 = vld [vmem:[#allocation2 + $0x28] sm:$0xff] }
  0x4c   :  { %1325 = vmatmul.mubr.msk.f32.gmra.mrb[4].mxu0 %vm162_vm0, %v135_v52  ;;  %1337 = vmatmul.mubr.msk.f32.gmra.mrb[4].mxu1 %vm162_vm0, %v143_v53 }
  0x4d   :  { %1327 = vmatprep.mubr.msk.f32.mxu0 %vm162_vm0, %v136_v54  ;;  %1339 = vmatprep.mubr.msk.f32.mxu1 %vm162_vm0, %v144_v56  ;;  %v424_v54 = vld [vmem:[%s2437_s0 + $0x20] sm:$0xff] }
  0x50   :  { %1328 = vmatmul.mubr.msk.f32.gmra.mrb[6].mxu0 %vm162_vm0, %v137_v58  ;;  %1340 = vmatmul.mubr.msk.f32.gmra.mrb[6].mxu1 %vm162_vm0, %v145_v59  ;;  %v1987_v58 = vld [vmem:[#allocation2 + $0x60] sm:$0xff] }
  0x51   :  { %v428_v59 = vld [vmem:[%s2437_s0 + $0x40] sm:$0xff] }
  0x87   :  { %v1887_v15 = vpop.permute.xlu0 %441  ;;  %v1889_v16 = vpop.permute.xlu1 %438 }
 0x117   :  { %v1788_v60 = vpop.f32.mrb[0].mxu0  ;;  %v1790_v61 = vpop.f32.mrb[0].mxu1 }
 0x118   :  { %555 = vmax.xlane.f32.xlu1 %v1790_v61  ;;  %539 = vmax.xlane.f32.xlu0 %v1788_v60  ;;  %v1794_v62 = vpop.f32.mrb[1].mxu0  ;;  %v1796_v63 = vpop.f32.mrb[1].mxu1 }
 0x11b   :  { %v1798_v0 = vpop.f32.mrb[2].mxu0  ;;  %v1800_v1 = vpop.f32.mrb[2].mxu1 }
 0x11c   :  { %537 = vmax.xlane.f32.xlu0 %v1794_v62  ;;  %543 = vmax.xlane.f32.xlu1 %v1798_v0  ;;  %v1804_v2 = vpop.f32.mrb[3].mxu0  ;;  %v1806_v3 = vpop.f32.mrb[3].mxu1 }
 0x11f   :  { %v1824_v5 = vpop.f32.mrb[4].mxu0  ;;  %v1826_v6 = vpop.f32.mrb[4].mxu1 }
 0x120   :  { %553 = vmax.xlane.f32.xlu0 %v1796_v63  ;;  %559 = vmax.xlane.f32.xlu1 %v1800_v1  ;;  %v1830_v7 = vpop.f32.mrb[5].mxu0  ;;  %v1832_v8 = vpop.f32.mrb[5].mxu1 }
 0x123   :  { %v1834_v9 = vpop.f32.mrb[6].mxu0  ;;  %v1836_v10 = vpop.f32.mrb[6].mxu1 }
 0x124   :  { %557 = vmax.xlane.f32.xlu0 %v1806_v3  ;;  %541 = vmax.xlane.f32.xlu1 %v1804_v2  ;;  %v1840_v11 = vpop.f32.mrb[7].mxu0  ;;  %v1842_v12 = vpop.f32.mrb[7].mxu1 }
 0x128   :  { %547 = vmax.xlane.f32.xlu1 %v1824_v5  ;;  %545 = vmax.xlane.f32.xlu0 %v1830_v7 }
 0x12c   :  { %563 = vmax.xlane.f32.xlu1 %v1826_v6  ;;  %561 = vmax.xlane.f32.xlu0 %v1832_v8 }
 0x130   :  { %551 = vmax.xlane.f32.xlu1 %v1834_v9  ;;  %549 = vmax.xlane.f32.xlu0 %v1840_v11 }
 0x134   :  { %567 = vmax.xlane.f32.xlu1 %v1836_v10 }
 0x146   :  { %444 = vperm.xlu0 %1413, %v422_v14  }
 0x165   :  { %565 = vmax.xlane.f32.xlu0 %v1842_v12 }
 0x1a5   :  { %v556_v19 = vpop.xlane.xlu1 %555  ;;  %v540_v20 = vpop.xlane.xlu0 %539 }
 0x1a6   :  { %v1896_v21 = vmax.f32 %v1891_v17, %v556_v19  ;;  %v1899_v22 = vmax.f32 %v1893_v18, %v540_v20  ;;  %v425_v19 = vld [vmem:[%s2437_s0 + $0x28] sm:$0xff] }
 0x1a8   :  { %979 = vst.msk [vmem:[#allocation2 + $0x48] sm:$0xff] %vm65_vm2, %v1896_v21  ;;  %971 = vst.msk [vmem:[#allocation2 + $0x8] sm:$0xff] %vm65_vm2, %v1899_v22  ;;  %696 = vperm.xlu0 %1413, %v1896_v21   ;;  %656 = vperm.xlu1 %1412, %v1899_v22  }
 0x1a9   :  { %v538_v27 = vpop.xlane.xlu0 %537  ;;  %v544_v28 = vpop.xlane.xlu1 %543 }
 0x1aa   :  { %v1916_v29 = vmax.f32 %v1901_v23, %v538_v27  ;;  %v1919_v30 = vmax.f32 %v1903_v24, %v544_v28  ;;  %v2007_v28 = vld [vmem:[#allocation2 + $0x38] sm:$0xff] }
 0x1ac   :  { %970 = vst.msk [vmem:[#allocation2] sm:$0xff] %vm65_vm2, %v1916_v29  ;;  %973 = vst.msk [vmem:[#allocation2 + $0x18] sm:$0xff] %vm65_vm2, %v1919_v30  ;;  %651 = vperm.xlu0 %1413, %v1916_v29  }
 0x1ad   :  { %v554_v35 = vpop.xlane.xlu0 %553  ;;  %v560_v36 = vpop.xlane.xlu1 %559 }
 0x1ae   :  { %v1935_v37 = vmax.f32 %v1921_v31, %v554_v35  ;;  %v1938_v38 = vmax.f32 %v1923_v32, %v560_v36  ;;  %v2009_v35 = vld [vmem:[#allocation2 + $0x30] sm:$0xff] }
 0x1b0   :  { %978 = vst.msk [vmem:[#allocation2 + $0x40] sm:$0xff] %vm65_vm2, %v1935_v37  ;;  %981 = vst.msk [vmem:[#allocation2 + $0x58] sm:$0xff] %vm65_vm2, %v1938_v38  ;;  %691 = vperm.xlu1 %1412, %v1935_v37   ;;  %706 = vperm.xlu0 %1413, %v1938_v38  }
 0x1b1   :  { %v558_v43 = vpop.xlane.xlu0 %557  ;;  %v542_v44 = vpop.xlane.xlu1 %541 }
 0x1b2   :  { %v1958_v46 = vmax.f32 %v1940_v39, %v558_v43  ;;  %v1961_v47 = vmax.f32 %v1942_v40, %v542_v44  ;;  %v22_v43 = vlaneseq }
 0x1b4   :  { %980 = vst.msk [vmem:[#allocation2 + $0x50] sm:$0xff] %vm65_vm2, %v1958_v46  ;;  %972 = vst.msk [vmem:[#allocation2 + $0x10] sm:$0xff] %vm65_vm2, %v1961_v47  ;;  %666 = vperm.xlu1 %1412, %v1919_v30   ;;  %447 = vperm.xlu0 %1413, %v423_v45   ;;  %v2068_v42 = vand.u32 127, %v22_v43 }
 0x1b5   :  { %v548_v52 = vpop.xlane.xlu1 %547  ;;  %v546_v53 = vpop.xlane.xlu0 %545 }
 0x1b6   :  { %v1980_v55 = vmax.f32 %v1963_v48, %v548_v52  ;;  %v1983_v56 = vmax.f32 %v1965_v49, %v546_v53  ;;  %v427_v52 = vld [vmem:[%s2437_s0 + $0x38] sm:$0xff] }
 0x1b8   :  { %975 = vst.msk [vmem:[#allocation2 + $0x28] sm:$0xff] %vm65_vm2, %v1980_v55  ;;  %974 = vst.msk [vmem:[#allocation2 + $0x20] sm:$0xff] %vm65_vm2, %v1983_v56  ;;  %661 = vperm.xlu1 %1412, %v1961_v47   ;;  %450 = vperm.xlu0 %1413, %v424_v54  }
 0x1b9   :  { %v564_v13 = vpop.xlane.xlu1 %563  ;;  %v562_v14 = vpop.xlane.xlu0 %561 }
 0x1ba   :  { %v2002_v20 = vmax.f32 %v1985_v57, %v564_v13  ;;  %v2005_v27 = vmax.f32 %v1987_v58, %v562_v14  ;;  %v2029_v13 = vld [vmem:[#allocation2 + $0x78] sm:$0xff]  ;;  %v2085_v14 = vld [vmem:[#allocation2 + $0x70] sm:$0xff] }
 0x1bb   :  { %2448 = vst [vmem:[#allocation8_spill] sm:$0xff] %v2029_v13 }
 0x1bc   :  { %983 = vst.msk [vmem:[#allocation2 + $0x68] sm:$0xff] %vm65_vm2, %v2002_v20  ;;  %982 = vst.msk [vmem:[#allocation2 + $0x60] sm:$0xff] %vm65_vm2, %v2005_v27  ;;  %701 = vperm.xlu1 %1412, %v1958_v46   ;;  %453 = vperm.xlu0 %1413, %v425_v19   ;;  %v2075_v19 = vshrl.u32 %v22_v43, 7 }
 0x1bd   :  { %v552_v44 = vpop.xlane.xlu1 %551  ;;  %v550_v45 = vpop.xlane.xlu0 %549 }
 0x1be   :  { %v2024_v53 = vmax.f32 %v2007_v28, %v552_v44  ;;  %v2027_v54 = vmax.f32 %v2009_v35, %v550_v45  ;;  %v429_v44 = vld [vmem:[%s2437_s0 + $0x48] sm:$0xff]  ;;  %vm404_vm4 = vcmp.ne.s32.totalorder %v2068_v42, %v2075_v19  ;;  %v24_v50 = vadd.s32 8, %v2075_v19 }
 0x1c0   :  { %977 = vst.msk [vmem:[#allocation2 + $0x38] sm:$0xff] %vm65_vm2, %v2024_v53  ;;  %976 = vst.msk [vmem:[#allocation2 + $0x30] sm:$0xff] %vm65_vm2, %v2027_v54  ;;  %676 = vperm.xlu1 %1412, %v1980_v55   ;;  %459 = vperm.xlu0 %1413, %v427_v52   ;;  %v431_v52 = vld [vmem:[%s2437_s0 + $0x58] sm:$0xff]  ;;  %vm405_vm7 = vcmp.ne.s32.totalorder %v2068_v42, %v24_v50 }
 0x1c1   :  { %v568_v45 = vpop.xlane.xlu1 %567 }
 0x1c2   :  { %v2044_v36 = vmax.f32 %v2029_v13, %v568_v45  ;;  %v433_v45 = vld [vmem:[%s2437_s0 + $0x68] sm:$0xff] }
 0x1c4   :  { %2449 = vst [vmem:[#allocation9_spill] sm:$0xff] %v2044_v36  ;;  %671 = vperm.xlu1 %1412, %v1983_v56   ;;  %465 = vperm.xlu0 %1413, %v429_v44   ;;  %985 = vst.msk [vmem:[#allocation2 + $0x78] sm:$0xff] %vm65_vm2, %v2044_v36  ;;  %v435_v44 = vld [vmem:[%s2437_s0 + $0x78] sm:$0xff] }
 0x1c8   :  { %711 = vperm.xlu1 %1412, %v2005_v27   ;;  %471 = vperm.xlu0 %1413, %v431_v52   ;;  %v426_v52 = vld [vmem:[%s2437_s0 + $0x30] sm:$0xff] }
 0x1cc   :  { %686 = vperm.xlu1 %1412, %v2024_v53   ;;  %477 = vperm.xlu0 %1413, %v433_v45   ;;  %v2073_v45 = vld [vmem:[%s2438_s1] ss:$0 sm:$0xff] }
 0x1cd   :  { %vm489_vm3 = vcmp.eq.s32.totalorder %v1889_v16, %v2073_v45  ;;  %v434_v16 = vld [vmem:[%s2437_s0 + $0x70] sm:$0xff]  ;;  %vm490_vm6 = vcmp.eq.s32.totalorder %v1887_v15, %v2073_v45 }
 0x1ce   :  { %vm505_vm5 = vmand %vm489_vm3, %vm404_vm4 }
 0x1cf   :  { %vm506_vm8 = vmand %vm490_vm6, %vm405_vm7 }
 0x1d0   :  { %681 = vperm.xlu1 %1412, %v2027_v54   ;;  %483 = vperm.xlu0 %1413, %v435_v44   ;;  %v445_v44 = vpop.permute.xlu0 %444  ;;  %v522_v15 = vsel %vm506_vm8, %v1788_v60, 0.0 }
 0x1d1   :  { %vm491_vm9 = vcmp.eq.s32.totalorder %v445_v44, %v2073_v45 }
 0x1d4   :  { %716 = vperm.xlu1 %1412, %v2002_v20  }
 0x1d8   :  { %726 = vperm.xlu1 %1412, %v2044_v36  }
 0x1dc   :  { %456 = vperm.xlu1 %1412, %v426_v52   ;;  %v521_v52 = vsel %vm505_vm5, %v1794_v62, 0.0 }
 0x1ef   :  { %906 = vadd.xlane.f32.xlu0 %v521_v52  ;;  %v430_v52 = vld [vmem:[%s2437_s0 + $0x50] sm:$0xff] }
 0x1f2   :  { %v566_v4 = vpop.xlane.xlu0 %565 }
 0x1f3   :  { %v2088_v43 = vmax.f32 %v2085_v14, %v566_v4  ;;  %v432_v4 = vld [vmem:[%s2437_s0 + $0x60] sm:$0xff] }
 0x1f5   :  { %2450 = vst [vmem:[#allocation10_spill] sm:$0xff] %v2088_v43  ;;  %984 = vst.msk [vmem:[#allocation2 + $0x70] sm:$0xff] %vm65_vm2, %v2088_v43  ;;  %721 = vperm.xlu1 %1412, %v2088_v43  }
 0x1f9   :  { %462 = vperm.xlu1 %1412, %v428_v59   ;;  %v2112_v59 = vadd.s32 16, %v2075_v19 }
 0x1fb   :  { %vm406_vm10 = vcmp.ne.s32.totalorder %v2068_v42, %v2112_v59 }
 0x1fc   :  { %vm507_vm11 = vmand %vm491_vm9, %vm406_vm10 }
 0x1fd   :  { %468 = vperm.xlu1 %1412, %v430_v52   ;;  %v523_v44 = vsel %vm507_vm11, %v1804_v2, 0.0 }
 0x201   :  { %474 = vperm.xlu1 %1412, %v432_v4  }
 0x205   :  { %480 = vperm.xlu1 %1412, %v434_v16  }
 0x227   :  { %v697_v52 = vpop.permute.xlu0 %696  ;;  %v657_v16 = vpop.permute.xlu1 %656 }
 0x228   :  { %v738_v4 = vsub.f32 %v1790_v61, %v697_v52  ;;  %v730_v51 = vsub.f32 %v1788_v60, %v657_v16  ;;  %v2128_v52 = vadd.s32 24, %v2075_v19 }
 0x229   :  { %908 = vadd.xlane.f32.xlu1 %v522_v15 }
 0x22a   :  { %v747_v34 = vmul.f32 1.442695, %v730_v51  ;;  %v763_v33 = vmul.f32 1.442695, %v738_v4  ;;  %vm407_vm12 = vcmp.ne.s32.totalorder %v2068_v42, %v2128_v52  ;;  %v2136_v51 = vadd.s32 32, %v2075_v19 }
 0x22b   :  { %v652_v41 = vpop.permute.xlu0 %651 }
 0x22c   :  { %1414 = vpow2.f32 %v747_v34  ;;  %v729_v25 = vsub.f32 %v1794_v62, %v652_v41  ;;  %vm408_vm15 = vcmp.ne.s32.totalorder %v2068_v42, %v2136_v51 }
 0x22d   :  { %910 = vadd.xlane.f32.xlu1 %v523_v44  ;;  %1416 = vpow2.f32 %v763_v33  ;;  %v2148_v44 = vadd.s32 40, %v2075_v19 }
 0x22e   :  { %v745_v26 = vmul.f32 1.442695, %v729_v25  ;;  %v32_v25 = vadd.s32 72, %v2075_v19 }
 0x22f   :  { %v692_v16 = vpop.permute.xlu1 %691  ;;  %v2130_v60 = vpop.permute.xlu0 %706  ;;  %vm409_vm5 = vcmp.ne.s32.totalorder %v2068_v42, %v2148_v44 }
 0x230   :  { %v737_v15 = vsub.f32 %v1796_v63, %v692_v16  ;;  %vm413_vm3 = vcmp.ne.s32.totalorder %v2068_v42, %v32_v25 }
 0x232   :  { %v761_v36 = vmul.f32 1.442695, %v737_v15 }
 0x233   :  { %v667_v34 = vpop.permute.xlu1 %666  ;;  %v448_v62 = vpop.permute.xlu0 %447 }
 0x234   :  { %1418 = vpow2.f32 %v761_v36  ;;  %v732_v41 = vsub.f32 %v1798_v0, %v667_v34  ;;  %vm492_vm13 = vcmp.eq.s32.totalorder %v448_v62, %v2073_v45 }
 0x235   :  { %1420 = vpow2.f32 %v745_v26  ;;  %vm508_vm14 = vmand %vm492_vm13, %vm407_vm12  ;;  %v2151_v26 = vadd.s32 64, %v2075_v19 }
 0x236   :  { %v751_v33 = vmul.f32 1.442695, %v732_v41  ;;  %v524_v4 = vsel %vm508_vm14, %v1798_v0, 0.0  ;;  %v1415_v36 = vpop.eup %1414 }
 0x237   :  { %v662_v16 = vpop.permute.xlu1 %661  ;;  %v451_v15 = vpop.permute.xlu0 %450  ;;  %912 = vadd.xlane.f32.xlu1 %v524_v4  ;;  %v778_v0 = vsel %vm405_vm7, %v1415_v36, 0.0  ;;  %vm412_vm6 = vcmp.ne.s32.totalorder %v2068_v42, %v2151_v26 }
 0x238   :  { %v731_v34 = vsub.f32 %v1804_v2, %v662_v16  ;;  %vm493_vm0 = vcmp.eq.s32.totalorder %v451_v15, %v2073_v45  ;;  %v1417_v62 = vpop.eup %1416  ;;  %1422 = vpow2.f32 %v751_v33  ;;  %827 = vadd.xlane.f32.xlu0 %v778_v0 }
 0x239   :  { %vm509_vm1 = vmand %vm493_vm0, %vm408_vm15  ;;  %v786_v33 = vsel %vm413_vm3, %v1417_v62, 0.0 }
 0x23a   :  { %v749_v41 = vmul.f32 1.442695, %v731_v34  ;;  %v525_v4 = vsel %vm509_vm1, %v1830_v7, 0.0 }
 0x23b   :  { %v702_v2 = vpop.permute.xlu1 %701  ;;  %v454_v16 = vpop.permute.xlu0 %453  ;;  %914 = vadd.xlane.f32.xlu1 %v525_v4 }
 0x23c   :  { %1424 = vpow2.f32 %v749_v41  ;;  %v739_v50 = vsub.f32 %v1806_v3, %v702_v2  ;;  %vm494_vm7 = vcmp.eq.s32.totalorder %v454_v16, %v2073_v45  ;;  %843 = vadd.xlane.f32.xlu0 %v786_v33 }
 0x23d   :  { %vm510_vm8 = vmand %vm494_vm7, %vm409_vm5 }
 0x23e   :  { %v1419_v36 = vpop.eup %1418  ;;  %v765_v15 = vmul.f32 1.442695, %v739_v50  ;;  %v526_v34 = vsel %vm510_vm8, %v1824_v5, 0.0 }
 0x23f   :  { %v1421_v0 = vpop.eup %1420  ;;  %v677_v4 = vpop.permute.xlu1 %676  ;;  %916 = vadd.xlane.f32.xlu1 %v526_v34  ;;  %v785_v41 = vsel %vm412_vm6, %v1419_v36, 0.0  ;;  %v2186_v36 = vadd.s32 80, %v2075_v19 }
 0x240   :  { %v2174_v13 = vpop.permute.xlu0 %459  ;;  %1426 = vpow2.f32 %v765_v15  ;;  %v734_v62 = vsub.f32 %v1824_v5, %v677_v4  ;;  %841 = vadd.xlane.f32.xlu0 %v785_v41  ;;  %v777_v16 = vsel %vm404_vm4, %v1421_v0, 0.0 }
 0x241   :  { %vm414_vm4 = vcmp.ne.s32.totalorder %v2068_v42, %v2186_v36  ;;  %vm496_vm13 = vcmp.eq.s32.totalorder %v2174_v13, %v2073_v45 }
 0x242   :  { %v755_v2 = vmul.f32 1.442695, %v734_v62  ;;  %v1423_v50 = vpop.eup %1422 }
 0x243   :  { %v672_v33 = vpop.permute.xlu1 %671  ;;  %825 = vadd.xlane.f32.xlu1 %v777_v16  ;;  %v780_v4 = vsel %vm407_vm12, %v1423_v50, 0.0  ;;  %v740_v50 = vsub.f32 %v1800_v1, %v2130_v60 }
 0x244   :  { %v466_v43 = vpop.permute.xlu0 %465  ;;  %1428 = vpow2.f32 %v755_v2  ;;  %v733_v34 = vsub.f32 %v1830_v7, %v672_v33 }
 0x245   :  { %vm498_vm9 = vcmp.eq.s32.totalorder %v466_v43, %v2073_v45 }
 0x246   :  { %vm2190_vm11 = vmand %vm498_vm9, %vm413_vm3  ;;  %v1425_v15 = vpop.eup %1424  ;;  %v753_v0 = vmul.f32 1.442695, %v733_v34 }
 0x247   :  { %v530_v7 = vsel %vm2190_vm11, %v1790_v61, 0.0  ;;  %v712_v43 = vpop.permute.xlu1 %711  ;;  %831 = vadd.xlane.f32.xlu1 %v780_v4  ;;  %v779_v25 = vsel %vm406_vm10, %v1425_v15, 0.0  ;;  %v767_v4 = vmul.f32 1.442695, %v740_v50 }
 0x248   :  { %1430 = vpow2.f32 %v753_v0  ;;  %829 = vadd.xlane.f32.xlu0 %v779_v25  ;;  %v741_v25 = vsub.f32 %v1832_v8, %v712_v43 }
 0x24a   :  { %v1427_v41 = vpop.eup %1426  ;;  %v769_v44 = vmul.f32 1.442695, %v741_v25 }
 0x24b   :  { %v687_v62 = vpop.permute.xlu1 %686  ;;  %v787_v52 = vsel %vm414_vm4, %v1427_v41, 0.0 }
 0x24c   :  { %v736_v2 = vsub.f32 %v1834_v9, %v687_v62  ;;  %845 = vadd.xlane.f32.xlu0 %v787_v52  ;;  %v30_v52 = vadd.s32 56, %v2075_v19 }
 0x24e   :  { %v1429_v16 = vpop.eup %1428  ;;  %v759_v59 = vmul.f32 1.442695, %v736_v2  ;;  %vm411_vm10 = vcmp.ne.s32.totalorder %v2068_v42, %v30_v52 }
 0x24f   :  { %v682_v33 = vpop.permute.xlu1 %681  ;;  %v782_v34 = vsel %vm409_vm5, %v1429_v16, 0.0  ;;  %v29_v16 = vadd.s32 48, %v2075_v19  ;;  %vm512_vm0 = vmand %vm496_vm13, %vm411_vm10 }
 0x250   :  { %1432 = vpow2.f32 %v759_v59  ;;  %v735_v15 = vsub.f32 %v1840_v11, %v682_v33  ;;  %835 = vadd.xlane.f32.xlu1 %v782_v34  ;;  %v34_v34 = vadd.s32 88, %v2075_v19  ;;  %v528_v13 = vsel %vm512_vm0, %v1834_v9, 0.0 }
 0x251   :  { %vm410_vm12 = vcmp.ne.s32.totalorder %v2068_v42, %v29_v16 }
 0x252   :  { %v1431_v0 = vpop.eup %1430  ;;  %v757_v41 = vmul.f32 1.442695, %v735_v15  ;;  %vm415_vm1 = vcmp.ne.s32.totalorder %v2068_v42, %v34_v34 }
 0x253   :  { %v717_v62 = vpop.permute.xlu1 %716  ;;  %v781_v60 = vsel %vm408_vm15, %v1431_v0, 0.0 }
 0x254   :  { %1434 = vpow2.f32 %v757_v41  ;;  %833 = vadd.xlane.f32.xlu0 %v781_v60  ;;  %v742_v2 = vsub.f32 %v1826_v6, %v717_v62  ;;  %v35_v41 = vadd.s32 96, %v2075_v19 }
 0x255   :  { %1436 = vpow2.f32 %v767_v4 }
 0x256   :  { %1438 = vpow2.f32 %v769_v44  ;;  %v771_v43 = vmul.f32 1.442695, %v742_v2  ;;  %vm416_vm3 = vcmp.ne.s32.totalorder %v2068_v42, %v35_v41  ;;  %v472_v2 = vpop.permute.xlu0 %471  ;;  %v2453_v41 = vsub.f32 %v1893_v18, %v1899_v22 }
 0x257   :  { %v727_v59 = vpop.permute.xlu1 %726  ;;  %v2456_v18 = vsub.f32 %v1901_v23, %v1916_v29  ;;  %v894_v29 = vld [vmem:[#allocation4 + $0x20] sm:$0xff] }
 0x258   :  { %1440 = vpow2.f32 %v771_v43 }
 0x259   :  { %v617_v22 = vmul.f32 1.442695, %v2456_v18  ;;  %v2462_v18 = vsub.f32 %v2007_v28, %v2024_v53  ;;  %v797_v53 = vld [vmem:[#allocation3 + $0x20] sm:$0xff] }
 0x25a   :  { %v1433_v50 = vpop.eup %1432  ;;  %v478_v16 = vpop.permute.xlu0 %477 }
 0x25b   :  { %v457_v51 = vpop.permute.xlu1 %456  ;;  %v784_v33 = vsel %vm411_vm10, %v1433_v50, 0.0  ;;  %v744_v50 = vsub.f32 %v1836_v10, %v727_v59  ;;  %vm500_vm10 = vcmp.eq.s32.totalorder %v472_v2, %v2073_v45  ;;  %v891_v2 = vld [vmem:[#allocation4 + $0x8] sm:$0xff] }
 0x25c   :  { %vm495_vm14 = vcmp.eq.s32.totalorder %v457_v51, %v2073_v45  ;;  %839 = vadd.xlane.f32.xlu0 %v784_v33  ;;  %vm516_vm11 = vmand %vm500_vm10, %vm415_vm1 }
 0x25d   :  { %vm511_vm15 = vmand %vm495_vm14, %vm410_vm12  ;;  %v775_v33 = vmul.f32 1.442695, %v744_v50 }
 0x25e   :  { %v1435_v15 = vpop.eup %1434  ;;  %v527_v0 = vsel %vm511_vm15, %v1840_v11, 0.0  ;;  %v36_v11 = vadd.s32 104, %v2075_v19 }
 0x25f   :  { %918 = vadd.xlane.f32.xlu1 %v527_v0  ;;  %v783_v4 = vsel %vm410_vm12, %v1435_v15, 0.0  ;;  %v1437_v25 = vpop.eup %1436  ;;  %v484_v0 = vpop.permute.xlu0 %483 }
 0x260   :  { %837 = vadd.xlane.f32.xlu0 %v783_v4  ;;  %v788_v62 = vsel %vm415_vm1, %v1437_v25, 0.0  ;;  %v1439_v60 = vpop.eup %1438  ;;  %vm417_vm5 = vcmp.ne.s32.totalorder %v2068_v42, %v36_v11  ;;  %v890_v25 = vld [vmem:[#allocation4] sm:$0xff]  ;;  %vm504_vm0 = vcmp.eq.s32.totalorder %v484_v0, %v2073_v45  ;;  %v794_v0 = vld [vmem:[#allocation3 + $0x8] sm:$0xff] }
 0x261   :  { %v789_v52 = vsel %vm416_vm3, %v1439_v60, 0.0 }
 0x262   :  { %v1441_v44 = vpop.eup %1440 }
 0x263   :  { %920 = vadd.xlane.f32.xlu1 %v528_v13  ;;  %v790_v9 = vsel %vm417_vm5, %v1441_v44, 0.0 }
 0x264   :  { %847 = vadd.xlane.f32.xlu0 %v788_v62 }
 0x268   :  { %849 = vadd.xlane.f32.xlu0 %v789_v52  ;;  %v37_v52 = vadd.s32 112, %v2075_v19 }
 0x26a   :  { %vm418_vm12 = vcmp.ne.s32.totalorder %v2068_v42, %v37_v52 }
 0x26c   :  { %851 = vadd.xlane.f32.xlu0 %v790_v9  ;;  %v38_v9 = vadd.s32 120, %v2075_v19 }
 0x26e   :  { %vm419_vm14 = vcmp.ne.s32.totalorder %v2068_v42, %v38_v9  ;;  %v892_v42 = vld [vmem:[#allocation4 + $0x10] sm:$0xff]  ;;  %v801_v9 = vld [vmem:[#allocation3 + $0x40] sm:$0xff] }
 0x274   :  { %v722_v43 = vpop.permute.xlu1 %721 }
 0x275   :  { %v743_v51 = vsub.f32 %v1842_v12, %v722_v43 }
 0x277   :  { %v773_v15 = vmul.f32 1.442695, %v743_v51 }
 0x278   :  { %v463_v4 = vpop.permute.xlu1 %462 }
 0x279   :  { %1442 = vpow2.f32 %v773_v15  ;;  %vm497_vm7 = vcmp.eq.s32.totalorder %v463_v4, %v2073_v45  ;;  %v893_v15 = vld [vmem:[#allocation4 + $0x18] sm:$0xff]  ;;  %v2458_v4 = vsub.f32 %v1942_v40, %v1961_v47 }
 0x27a   :  { %vm513_vm8 = vmand %vm497_vm7, %vm412_vm6  ;;  %1444 = vpow2.f32 %v775_v33 }
 0x27b   :  { %v529_v13 = vsel %vm513_vm8, %v1796_v63, 0.0  ;;  %vm520_vm8 = vmand %vm504_vm0, %vm419_vm14 }
 0x27c   :  { %v469_v62 = vpop.permute.xlu1 %468  ;;  %v907_v59 = vpop.xlane.xlu0 %906  ;;  %922 = vadd.xlane.f32.xlu1 %v529_v13  ;;  %v536_v34 = vsel %vm520_vm8, %v1836_v10, 0.0 }
 0x27d   :  { %vm499_vm9 = vcmp.eq.s32.totalorder %v469_v62, %v2073_v45  ;;  %v938_v60 = vadd.f32 %v907_v59, %v890_v25  ;;  %v802_v59 = vld [vmem:[#allocation3 + $0x48] sm:$0xff] }
 0x27e   :  { %vm515_vm6 = vmand %vm499_vm9, %vm414_vm4  ;;  %vm502_vm4 = vcmp.eq.s32.totalorder %v478_v16, %v2073_v45 }
 0x27f   :  { %954 = vst.msk [vmem:[#allocation4] sm:$0xff] %vm65_vm2, %v938_v60  ;;  %v531_v44 = vsel %vm515_vm6, %v1806_v3, 0.0  ;;  %vm518_vm15 = vmand %vm502_vm4, %vm417_vm5  ;;  %v2459_v60 = vsub.f32 %v1940_v39, %v1958_v46 }
 0x280   :  { %924 = vadd.xlane.f32.xlu1 %v530_v7  ;;  %v475_v63 = vpop.permute.xlu1 %474  ;;  %v532_v7 = vsel %vm516_vm11, %v1800_v1, 0.0  ;;  %v534_v19 = vsel %vm518_vm15, %v1826_v6, 0.0 }
 0x281   :  { %vm501_vm13 = vcmp.eq.s32.totalorder %v475_v63, %v2073_v45  ;;  %v637_v52 = vmul.f32 1.442695, %v2459_v60 }
 0x282   :  { %vm517_vm1 = vmand %vm501_vm13, %vm416_vm3 }
 0x283   :  { %v1443_v26 = vpop.eup %1442  ;;  %v533_v1 = vsel %vm517_vm1, %v1832_v8, 0.0  ;;  %v2454_v8 = vsub.f32 %v1891_v17, %v1896_v21  ;;  %v2457_v21 = vsub.f32 %v1903_v24, %v1919_v30 }
 0x284   :  { %926 = vadd.xlane.f32.xlu1 %v531_v44  ;;  %v791_v5 = vsel %vm418_vm12, %v1443_v26, 0.0  ;;  %v1445_v61 = vpop.eup %1444  ;;  %v481_v36 = vpop.permute.xlu1 %480  ;;  %v895_v44 = vld [vmem:[#allocation4 + $0x28] sm:$0xff] }
 0x285   :  { %853 = vadd.xlane.f32.xlu0 %v791_v5  ;;  %v792_v3 = vsel %vm419_vm14, %v1445_v61, 0.0  ;;  %vm503_vm7 = vcmp.eq.s32.totalorder %v481_v36, %v2073_v45  ;;  %v619_v45 = vmul.f32 1.442695, %v2453_v41  ;;  %v635_v50 = vmul.f32 1.442695, %v2454_v8  ;;  %v795_v8 = vld [vmem:[#allocation3 + $0x10] sm:$0xff] }
 0x286   :  { %vm519_vm9 = vmand %vm503_vm7, %vm418_vm12  ;;  %v623_v33 = vmul.f32 1.442695, %v2457_v21  ;;  %v2460_v5 = vsub.f32 %v1963_v48, %v1980_v55 }
 0x287   :  { %v535_v11 = vsel %vm519_vm9, %v1842_v12, 0.0  ;;  %1446 = vpow2.f32 %v619_v45  ;;  %v2455_v12 = vsub.f32 %v1921_v31, %v1935_v37  ;;  %v621_v31 = vmul.f32 1.442695, %v2458_v4 }
 0x288   :  { %928 = vadd.xlane.f32.xlu1 %v532_v7  ;;  %1448 = vpow2.f32 %v635_v50  ;;  %v627_v61 = vmul.f32 1.442695, %v2460_v5  ;;  %v793_v7 = vld [vmem:[#allocation3] sm:$0xff]  ;;  %v2463_v4 = vsub.f32 %v2009_v35, %v2027_v54  ;;  %v2465_v35 = vsub.f32 %v1987_v58, %v2005_v27 }
 0x289   :  { %855 = vadd.xlane.f32.xlu0 %v792_v3  ;;  %v633_v51 = vmul.f32 1.442695, %v2455_v12  ;;  %v803_v12 = vld [vmem:[#allocation3 + $0x50] sm:$0xff] }
 0x28a   :  { %v641_v54 = vmul.f32 1.442695, %v2465_v35 }
 0x28b   :  { %1450 = vpow2.f32 %v633_v51 }
 0x28c   :  { %932 = vadd.xlane.f32.xlu1 %v534_v19  ;;  %1452 = vpow2.f32 %v617_v22  ;;  %v631_v22 = vmul.f32 1.442695, %v2462_v18 }
 0x28d   :  { %930 = vadd.xlane.f32.xlu0 %v533_v1  ;;  %1454 = vpow2.f32 %v623_v33 }
 0x28e   :  { %1456 = vpow2.f32 %v621_v31  ;;  %v629_v31 = vmul.f32 1.442695, %v2463_v4  ;;  %v1010_v4 = vld [vmem:[%s2439_s2 + $0x28] sm:$0xff] }
 0x28f   :  { %1458 = vpow2.f32 %v637_v52 }
 0x290   :  { %936 = vadd.xlane.f32.xlu1 %v536_v34  ;;  %1460 = vpow2.f32 %v627_v61  ;;  %v2461_v34 = vsub.f32 %v1965_v49, %v1983_v56 }
 0x291   :  { %934 = vadd.xlane.f32.xlu0 %v535_v11  ;;  %v1447_v17 = vpop.eup %1446 }
 0x292   :  { %v810_v13 = vmul.f32 %v1447_v17, %v794_v0  ;;  %v1449_v62 = vpop.eup %1448  ;;  %v625_v11 = vmul.f32 1.442695, %v2461_v34  ;;  %v805_v34 = vld [vmem:[#allocation3 + $0x60] sm:$0xff] }
 0x293   :  { %v818_v47 = vmul.f32 %v1449_v62, %v802_v59  ;;  %v2464_v62 = vsub.f32 %v1923_v32, %v1938_v38 }
 0x294   :  { %1462 = vpow2.f32 %v625_v11  ;;  %v1006_v11 = vld [vmem:[%s2439_s2 + $0x8] sm:$0xff] }
 0x295   :  { %v1451_v63 = vpop.eup %1450  ;;  %1464 = vpow2.f32 %v631_v22  ;;  %v2467_v22 = vld [vmem:[#allocation10_spill] sm:$0xff] }
 0x296   :  { %v1453_v46 = vpop.eup %1452  ;;  %v817_v19 = vmul.f32 %v1451_v63, %v801_v9  ;;  %1466 = vpow2.f32 %v629_v31  ;;  %v799_v63 = vld [vmem:[#allocation3 + $0x30] sm:$0xff] }
 0x297   :  { %v809_v55 = vmul.f32 %v1453_v46, %v793_v7  ;;  %v1455_v41 = vpop.eup %1454  ;;  %v1005_v7 = vld [vmem:[%s2439_s2] sm:$0xff] }
 0x2b6   :  { %v909_v6 = vpop.xlane.xlu1 %908 }
 0x2b7   :  { %v939_v16 = vadd.f32 %v909_v6, %v891_v2  ;;  %v796_v2 = vld [vmem:[#allocation3 + $0x18] sm:$0xff]  ;;  %v1457_v6 = vpop.eup %1456 }
 0x2b8   :  { %v812_v50 = vmul.f32 %v1455_v41, %v796_v2  ;;  %v1459_v49 = vpop.eup %1458 }
 0x2b9   :  { %955 = vst.msk [vmem:[#allocation4 + $0x8] sm:$0xff] %vm65_vm2, %v939_v16  ;;  %v819_v17 = vmul.f32 %v1459_v49, %v803_v12  ;;  %v1461_v21 = vpop.eup %1460  ;;  %v1008_v49 = vld [vmem:[%s2439_s2 + $0x18] sm:$0xff] }
 0x2ba   :  { %v911_v10 = vpop.xlane.xlu1 %910 }
 0x2bb   :  { %v940_v43 = vadd.f32 %v911_v10, %v892_v42  ;;  %v811_v10 = vmul.f32 %v1457_v6, %v795_v8  ;;  %v806_v8 = vld [vmem:[#allocation3 + $0x68] sm:$0xff] }
 0x2bd   :  { %956 = vst.msk [vmem:[#allocation4 + $0x10] sm:$0xff] %vm65_vm2, %v940_v43 }
 0x2c4   :  { %v913_v37 = vpop.xlane.xlu1 %912 }
 0x2c5   :  { %v941_v25 = vadd.f32 %v913_v37, %v893_v15  ;;  %v828_v23 = vpop.xlane.xlu0 %827  ;;  %v798_v15 = vld [vmem:[#allocation3 + $0x28] sm:$0xff] }
 0x2c6   :  { %v858_v24 = vadd.f32 %v828_v23, %v810_v13  ;;  %v814_v37 = vmul.f32 %v1461_v21, %v798_v15  ;;  %v639_v23 = vmul.f32 1.442695, %v2464_v62 }
 0x2c7   :  { %957 = vst.msk [vmem:[#allocation4 + $0x18] sm:$0xff] %vm65_vm2, %v941_v25  ;;  %v1463_v25 = vpop.eup %1462 }
 0x2c8   :  { %v915_v30 = vpop.xlane.xlu1 %914  ;;  %875 = vst.msk [vmem:[#allocation3 + $0x8] sm:$0xff] %vm65_vm2, %v858_v24  ;;  %1468 = vpow2.f32 %v639_v23  ;;  %v1465_v52 = vpop.eup %1464  ;;  %v800_v24 = vld [vmem:[#allocation3 + $0x38] sm:$0xff] }
 0x2c9   :  { %v942_v40 = vadd.f32 %v915_v30, %v894_v29  ;;  %v844_v26 = vpop.xlane.xlu0 %843  ;;  %v813_v29 = vmul.f32 %v1463_v25, %v797_v53  ;;  %v2466_v30 = vsub.f32 %v1985_v57, %v2002_v20  ;;  %1470 = vpow2.f32 %v641_v54 }
 0x2ca   :  { %v866_v39 = vadd.f32 %v844_v26, %v818_v47  ;;  %v816_v38 = vmul.f32 %v1465_v52, %v800_v24 }
 0x2cb   :  { %958 = vst.msk [vmem:[#allocation4 + $0x20] sm:$0xff] %vm65_vm2, %v942_v40  ;;  %v643_v32 = vmul.f32 1.442695, %v2466_v30  ;;  %v1467_v40 = vpop.eup %1466 }
 0x2cc   :  { %v917_v36 = vpop.xlane.xlu1 %916  ;;  %883 = vst.msk [vmem:[#allocation3 + $0x48] sm:$0xff] %vm65_vm2, %v866_v39  ;;  %v815_v27 = vmul.f32 %v1467_v40, %v799_v63  ;;  %v804_v39 = vld [vmem:[#allocation3 + $0x58] sm:$0xff]  ;;  %v1054_v40 = vld [vmem:[#allocation2 + $0x8] sm:$0xff] }
 0x2cd   :  { %v943_v3 = vadd.f32 %v917_v36, %v895_v44  ;;  %v842_v1 = vpop.xlane.xlu0 %841  ;;  %v896_v44 = vld [vmem:[#allocation4 + $0x30] sm:$0xff]  ;;  %1472 = vpow2.f32 %v643_v32  ;;  %v897_v36 = vld [vmem:[#allocation4 + $0x38] sm:$0xff]  ;;  %v1013_v32 = vld [vmem:[%s2439_s2 + $0x40] sm:$0xff] }
 0x2ce   :  { %v865_v48 = vadd.f32 %v842_v1, %v817_v19  ;;  %1474 = vrcp.f32 %v1005_v7  ;;  %v992_v63 = vld [vmem:[#allocation4 + $0x18] sm:$0xff] }
 0x2cf   :  { %959 = vst.msk [vmem:[#allocation4 + $0x28] sm:$0xff] %vm65_vm2, %v943_v3  ;;  %1476 = vrcp.f32 %v1006_v11  ;;  %v1086_v2 = vld [vmem:[#allocation3 + $0x8] sm:$0xff] }
 0x2d0   :  { %v826_v45 = vpop.xlane.xlu1 %825  ;;  %882 = vst.msk [vmem:[#allocation3 + $0x40] sm:$0xff] %vm65_vm2, %v865_v48 }
 0x2d1   :  { %v857_v16 = vadd.f32 %v826_v45, %v809_v55  ;;  %v1007_v55 = vld [vmem:[%s2439_s2 + $0x10] sm:$0xff] }
 0x2d2   :  { %v1469_v9 = vpop.eup %1468  ;;  %1478 = vrcp.f32 %v1007_v55 }
 0x2d3   :  { %874 = vst.msk [vmem:[#allocation3] sm:$0xff] %vm65_vm2, %v857_v16  ;;  %v820_v20 = vmul.f32 %v1469_v9, %v804_v39  ;;  %v1471_v3 = vpop.eup %1470  ;;  %v1055_v39 = vld [vmem:[#allocation2 + $0x10] sm:$0xff] }
 0x2d4   :  { %v832_v42 = vpop.xlane.xlu1 %831  ;;  %v821_v45 = vmul.f32 %v1471_v3, %v805_v34 }
 0x2d5   :  { %v860_v56 = vadd.f32 %v832_v42, %v812_v50  ;;  %v830_v43 = vpop.xlane.xlu0 %829 }
 0x2d6   :  { %v859_v51 = vadd.f32 %v830_v43, %v811_v10  ;;  %v1009_v43 = vld [vmem:[%s2439_s2 + $0x20] sm:$0xff] }
 0x2d7   :  { %877 = vst.msk [vmem:[#allocation3 + $0x18] sm:$0xff] %vm65_vm2, %v860_v56  ;;  %v1473_v6 = vpop.eup %1472  ;;  %v1093_v34 = vld [vmem:[#allocation3 + $0x40] sm:$0xff] }
 0x2d8   :  { %876 = vst.msk [vmem:[#allocation3 + $0x10] sm:$0xff] %vm65_vm2, %v859_v51  ;;  %v822_v10 = vmul.f32 %v1473_v6, %v806_v8  ;;  %v1015_v6 = vld [vmem:[%s2439_s2 + $0x50] sm:$0xff] }
 0x2d9   :  { %v846_v33 = vpop.xlane.xlu0 %845 }
 0x2da   :  { %v867_v0 = vadd.f32 %v846_v33, %v819_v17  ;;  %v1085_v41 = vld [vmem:[#allocation3] sm:$0xff]  ;;  %v2468_v17 = vsub.f32 %v2085_v14, %v2467_v22  ;;  %v1475_v33 = vpop.eup %1474  ;;  %v990_v14 = vld [vmem:[#allocation4 + $0x8] sm:$0xff] }
 0x2db   :  { %1480 = vlog2.f32 %v1085_v41  ;;  %v1477_v15 = vpop.eup %1476 }
 0x2dc   :  { %884 = vst.msk [vmem:[#allocation3 + $0x50] sm:$0xff] %vm65_vm2, %v867_v0  ;;  %1482 = vlog2.f32 %v1086_v2  ;;  %v645_v21 = vmul.f32 1.442695, %v2468_v17  ;;  %v989_v0 = vld [vmem:[#allocation4] sm:$0xff]  ;;  %v1479_v31 = vpop.eup %1478  ;;  %v1024_v52 = vmul.f32 %v1477_v15, %v990_v14 }
 0x2dd   :  { %v836_v28 = vpop.xlane.xlu1 %835  ;;  %v1022_v62 = vmul.f32 %v1475_v33, %v989_v0  ;;  %v807_v33 = vld [vmem:[#allocation3 + $0x70] sm:$0xff] }
 0x2de   :  { %v862_v13 = vadd.f32 %v836_v28, %v814_v37  ;;  %v1088_v51 = vld [vmem:[#allocation3 + $0x18] sm:$0xff]  ;;  %v1011_v37 = vld [vmem:[%s2439_s2 + $0x30] sm:$0xff] }
 0x2df   :  { %v1087_v50 = vld [vmem:[#allocation3 + $0x10] sm:$0xff] }
 0x2e0   :  { %879 = vst.msk [vmem:[#allocation3 + $0x28] sm:$0xff] %vm65_vm2, %v862_v13  ;;  %1484 = vlog2.f32 %v1087_v50  ;;  %v991_v28 = vld [vmem:[#allocation4 + $0x10] sm:$0xff]  ;;  %v899_v50 = vld [vmem:[#allocation4 + $0x48] sm:$0xff] }
 0x2e1   :  { %v834_v59 = vpop.xlane.xlu0 %833  ;;  %1486 = vrcp.f32 %v1008_v49  ;;  %v1026_v24 = vmul.f32 %v1479_v31, %v991_v28  ;;  %v900_v28 = vld [vmem:[#allocation4 + $0x50] sm:$0xff] }
 0x2e2   :  { %v861_v60 = vadd.f32 %v834_v59, %v813_v29  ;;  %1488 = vrcp.f32 %v1009_v43  ;;  %v2469_v59 = vld [vmem:[#allocation8_spill] sm:$0xff] }
 0x2e3   :  { %1490 = vlog2.f32 %v1088_v51  ;;  %v1095_v0 = vld [vmem:[#allocation3 + $0x50] sm:$0xff] }
 0x2e4   :  { %878 = vst.msk [vmem:[#allocation3 + $0x20] sm:$0xff] %vm65_vm2, %v861_v60  ;;  %v2470_v60 = vld [vmem:[#allocation9_spill] sm:$0xff] }
 0x2e5   :  { %v1481_v25 = vpop.eup %1480  ;;  %v2471_v35 = vsub.f32 %v2469_v59, %v2470_v60 }
 0x2e6   :  { %v1483_v13 = vpop.eup %1482  ;;  %v1102_v30 = vmul.f32 0.6931472, %v1481_v25 }
 0x2e7   :  { %v1090_v53 = vld [vmem:[#allocation3 + $0x28] sm:$0xff]  ;;  %v647_v54 = vmul.f32 1.442695, %v2471_v35  ;;  %v808_v35 = vld [vmem:[#allocation3 + $0x78] sm:$0xff] }
 0x2e9   :  { %v840_v47 = vpop.xlane.xlu0 %839 }
 0x2ea   :  { %v864_v26 = vadd.f32 %v840_v47, %v816_v38  ;;  %v1485_v29 = vpop.eup %1484  ;;  %v1053_v38 = vld [vmem:[#allocation2] sm:$0xff] }
 0x2eb   :  { %v1089_v18 = vld [vmem:[#allocation3 + $0x20] sm:$0xff]  ;;  %v1487_v47 = vpop.eup %1486 }
 0x2ec   :  { %881 = vst.msk [vmem:[#allocation3 + $0x38] sm:$0xff] %vm65_vm2, %v864_v26  ;;  %v919_v58 = vpop.xlane.xlu1 %918  ;;  %1492 = vlog2.f32 %v1089_v18  ;;  %v1012_v26 = vld [vmem:[%s2439_s2 + $0x38] sm:$0xff]  ;;  %v1489_v9 = vpop.eup %1488  ;;  %v1057_v18 = vld [vmem:[#allocation2 + $0x20] sm:$0xff] }
 0x2ed   :  { %v944_v5 = vadd.f32 %v919_v58, %v896_v44  ;;  %v838_v61 = vpop.xlane.xlu0 %837  ;;  %1494 = vpow2.f32 %v645_v21  ;;  %v1069_v44 = vsub.f32 %v1022_v62, %v1053_v38  ;;  %v1104_v58 = vmul.f32 0.6931472, %v1483_v13 }
 0x2ee   :  { %v863_v46 = vadd.f32 %v838_v61, %v815_v27  ;;  %1496 = vrcp.f32 %v1010_v4  ;;  %v1106_v27 = vmul.f32 0.6931472, %v1485_v29  ;;  %v1014_v61 = vld [vmem:[%s2439_s2 + $0x48] sm:$0xff] }
 0x2ef   :  { %960 = vst.msk [vmem:[#allocation4 + $0x30] sm:$0xff] %vm65_vm2, %v944_v5  ;;  %1498 = vrcp.f32 %v1011_v37  ;;  %v993_v5 = vld [vmem:[#allocation4 + $0x20] sm:$0xff]  ;;  %v1133_v3 = vsub.f32 %v1069_v44, %v1102_v30 }
 0x2f0   :  { %880 = vst.msk [vmem:[#allocation3 + $0x30] sm:$0xff] %vm65_vm2, %v863_v46  ;;  %v921_v57 = vpop.xlane.xlu1 %920  ;;  %1500 = vlog2.f32 %v1090_v53  ;;  %v1491_v46 = vpop.eup %1490  ;;  %v1016_v53 = vld [vmem:[%s2439_s2 + $0x58] sm:$0xff] }
 0x2f1   :  { %v945_v19 = vadd.f32 %v921_v57, %v897_v36  ;;  %v848_v1 = vpop.xlane.xlu0 %847  ;;  %v898_v36 = vld [vmem:[#allocation4 + $0x40] sm:$0xff]  ;;  %v1070_v57 = vsub.f32 %v1024_v52, %v1054_v40  ;;  %v1058_v52 = vld [vmem:[#allocation2 + $0x28] sm:$0xff] }
 0x2f2   :  { %v868_v48 = vadd.f32 %v848_v1, %v820_v20  ;;  %v1071_v20 = vsub.f32 %v1026_v24, %v1055_v39  ;;  %v1028_v1 = vmul.f32 %v1487_v47, %v992_v63 }
 0x2f3   :  { %961 = vst.msk [vmem:[#allocation4 + $0x38] sm:$0xff] %vm65_vm2, %v945_v19  ;;  %v1092_v7 = vld [vmem:[#allocation3 + $0x38] sm:$0xff]  ;;  %v1134_v55 = vsub.f32 %v1070_v57, %v1104_v58 }
 0x2f4   :  { %885 = vst.msk [vmem:[#allocation3 + $0x58] sm:$0xff] %vm65_vm2, %v868_v48  ;;  %v1030_v48 = vmul.f32 %v1489_v9, %v993_v5  ;;  %v1135_v41 = vsub.f32 %v1071_v20, %v1106_v27  ;;  %v1059_v27 = vld [vmem:[#allocation2 + $0x30] sm:$0xff]  ;;  %v1017_v20 = vld [vmem:[%s2439_s2 + $0x60] sm:$0xff] }
 0x2f5   :  { %v850_v16 = vpop.xlane.xlu0 %849  ;;  %v1150_v4 = vmul.f32 -1.0, %v1134_v55 }
 0x2f6   :  { %v869_v42 = vadd.f32 %v850_v16, %v821_v45  ;;  %v1493_v19 = vpop.eup %1492  ;;  %v1108_v16 = vmul.f32 0.6931472, %v1491_v46  ;;  %v995_v51 = vld [vmem:[#allocation4 + $0x30] sm:$0xff]  ;;  %v1073_v15 = vsub.f32 %v1030_v48, %v1057_v18  ;;  %v1151_v31 = vmul.f32 -1.0, %v1135_v41 }
 0x2f7   :  { %v1091_v23 = vld [vmem:[#allocation3 + $0x30] sm:$0xff]  ;;  %v1495_v45 = vpop.eup %1494  ;;  %v1110_v49 = vmul.f32 0.6931472, %v1493_v19  ;;  %v1166_v40 = vsel %vm65_vm2, %v1150_v4, 0.0  ;;  %v1060_v4 = vld [vmem:[#allocation2 + $0x38] sm:$0xff] }
 0x2f8   :  { %886 = vst.msk [vmem:[#allocation3 + $0x60] sm:$0xff] %vm65_vm2, %v869_v42  ;;  %1502 = vlog2.f32 %v1091_v23  ;;  %v1497_v8 = vpop.eup %1496  ;;  %v1056_v42 = vld [vmem:[#allocation2 + $0x18] sm:$0xff]  ;;  %v823_v60 = vmul.f32 %v1495_v45, %v807_v33  ;;  %v1168_v47 = vsel %vm65_vm2, %v1151_v31, 0.0 }
 0x2f9   :  { %v852_v56 = vpop.xlane.xlu0 %851  ;;  %1504 = vpow2.f32 %v647_v54  ;;  %v1499_v43 = vpop.eup %1498  ;;  %v1072_v22 = vsub.f32 %v1028_v1, %v1056_v42  ;;  %v1137_v23 = vsub.f32 %v1073_v15, %v1110_v49  ;;  %v1018_v54 = vld [vmem:[%s2439_s2 + $0x68] sm:$0xff]  ;;  %v1020_v45 = vld [vmem:[%s2439_s2 + $0x78] sm:$0xff]  ;;  %v1061_v42 = vld [vmem:[#allocation2 + $0x40] sm:$0xff] }
 0x2fa   :  { %v870_v12 = vadd.f32 %v852_v56, %v822_v10  ;;  %1506 = vrcp.f32 %v1013_v32  ;;  %v1094_v10 = vld [vmem:[#allocation3 + $0x48] sm:$0xff]  ;;  %v1149_v56 = vmul.f32 -1.0, %v1133_v3  ;;  %v1501_v17 = vpop.eup %1500  ;;  %v1034_v62 = vmul.f32 %v1499_v43, %v995_v51  ;;  %v996_v58 = vld [vmem:[#allocation4 + $0x38] sm:$0xff]  ;;  %v902_v15 = vld [vmem:[#allocation4 + $0x60] sm:$0xff] }
 0x2fb   :  { %1508 = vrcp.f32 %v1012_v26  ;;  %v1136_v14 = vsub.f32 %v1072_v22, %v1108_v16  ;;  %v1112_v32 = vmul.f32 0.6931472, %v1501_v17  ;;  %v1096_v9 = vld [vmem:[#allocation3 + $0x58] sm:$0xff]  ;;  %v1153_v19 = vmul.f32 -1.0, %v1137_v23 }
 0x2fc   :  { %887 = vst.msk [vmem:[#allocation3 + $0x68] sm:$0xff] %vm65_vm2, %v870_v12  ;;  %1510 = vrcp.f32 %v1014_v61  ;;  %v994_v12 = vld [vmem:[#allocation4 + $0x28] sm:$0xff]  ;;  %v1165_v29 = vsel %vm65_vm2, %v1149_v56, 0.0  ;;  %v1075_v3 = vsub.f32 %v1034_v62, %v1059_v27 }
 0x2fd   :  { %1512 = vlog2.f32 %v1092_v7  ;;  %v1032_v13 = vmul.f32 %v1497_v8, %v994_v12  ;;  %v1152_v5 = vmul.f32 -1.0, %v1136_v14  ;;  %v1167_v61 = vadd.f32 %v1166_v40, %v1165_v29  ;;  %v903_v12 = vld [vmem:[#allocation4 + $0x68] sm:$0xff]  ;;  %v1019_v14 = vld [vmem:[%s2439_s2 + $0x70] sm:$0xff]  ;;  %s1569_s2 = smov [#allocation5]  }
 0x2fe   :  { %1514 = vlog2.f32 %v1093_v34  ;;  %s1213_s12 = sshll.u32 %s1569_s2, 4  ;;  %s1214_s12 = int_to_ptr.vmem [resolvable:$true] %s1213_s12 }
 0x2ff   :  { %1516 = vrcp.f32 %v1015_v6  ;;  %v1074_v7 = vsub.f32 %v1032_v13, %v1058_v52  ;;  %v1169_v48 = vadd.f32 %v1168_v47, %v1167_v61  ;;  %v1170_v49 = vsel %vm65_vm2, %v1152_v5, 0.0  ;;  %v1097_v22 = vld [vmem:[#allocation3 + $0x60] sm:$0xff]  ;;  %v905_v52 = vld [vmem:[#allocation4 + $0x78] sm:$0xff]  ;;  %v904_v47 = vld [vmem:[#allocation4 + $0x70] sm:$0xff]  ;;  %s1542_s14 = scalar_lea.vmem %s1214_s12, 128  ;;  %p1547_p1 = scmp.lt.s32.totalorder %s1214_s12, %s1214_s12 }
 0x300   :  { %1518 = vlog2.f32 %v1094_v10  ;;  %p1543_p0 = scmp.ne.s32.totalorder %s1214_s12, %s1542_s14  ;;  %p1548_p2 = scmp.lt.s32.totalorder %s1542_s14, %s1542_s14 }
 0x301   :  { %1520 = vlog2.f32 %v1095_v0  ;;  %v1138_v6 = vsub.f32 %v1074_v7, %v1112_v32 }
 0x302   :  { %v1503_v37 = vpop.eup %1502  ;;  %1522 = vrcp.f32 %v1016_v53  ;;  %p1549_p3 = por %p1548_p2, %p1547_p1 }
 0x303   :  { %v1505_v59 = vpop.eup %1504  ;;  %v1114_v38 = vmul.f32 0.6931472, %v1503_v37  ;;  %1524 = vrcp.f32 %v1018_v54  ;;  %v1098_v10 = vld [vmem:[#allocation3 + $0x68] sm:$0xff]  ;;  %v1171_v37 = vadd.f32 %v1170_v49, %v1169_v48  ;;  %v1154_v13 = vmul.f32 -1.0, %v1138_v6 }
 0x304   :  { %v1507_v24 = vpop.eup %1506  ;;  %v824_v34 = vmul.f32 %v1505_v59, %v808_v35  ;;  %1526 = vlog2.f32 %v1096_v9  ;;  %p1550_p4 = pnand %p1549_p3, %p1543_p0 }
 0x305   :  { %v1509_v63 = vpop.eup %1508  ;;  %v1139_v16 = vsub.f32 %v1075_v3, %v1114_v38  ;;  %1528 = vrcp.f32 %v1017_v20  ;;  %v1174_v5 = vsel %vm65_vm2, %v1154_v13, 0.0 }
 0x306   :  { %v1511_v39 = vpop.eup %1510  ;;  %1530 = vrcp.f32 %v1020_v45 }
 0x307   :  { %v1513_v1 = vpop.eup %1512  ;;  %1532 = vlog2.f32 %v1098_v10  ;;  %v1155_v62 = vmul.f32 -1.0, %v1139_v16 }
 0x308   :  { %v1515_v55 = vpop.eup %1514  ;;  %v1116_v17 = vmul.f32 0.6931472, %v1513_v1  ;;  %1534 = vlog2.f32 %v1097_v22 }
 0x309   :  { %v923_v11 = vpop.xlane.xlu1 %922  ;;  %v1517_v56 = vpop.eup %1516  ;;  %v1118_v31 = vmul.f32 0.6931472, %v1515_v55  ;;  %1536 = vrcp.f32 %v1019_v14  ;;  %v1176_v61 = vsel %vm65_vm2, %v1155_v62, 0.0 }
 0x30a   :  { %v946_v2 = vadd.f32 %v923_v11, %v898_v36  ;;  %v901_v36 = vld [vmem:[#allocation4 + $0x58] sm:$0xff]  ;;  %v1519_v33 = vpop.eup %1518 }
 0x30b   :  { %v1521_v23 = vpop.eup %1520 }
 0x30c   :  { %962 = vst.msk [vmem:[#allocation4 + $0x40] sm:$0xff] %vm65_vm2, %v946_v2  ;;  %v1036_v2 = vmul.f32 %v1509_v63, %v996_v58  ;;  %v1523_v40 = vpop.eup %1522  ;;  %v1063_v58 = vld [vmem:[#allocation2 + $0x50] sm:$0xff]  ;;  %v1122_v27 = vmul.f32 0.6931472, %v1521_v23 }
 0x30d   :  { %v925_v21 = vpop.xlane.xlu1 %924 }
 0x30e   :  { %v947_v25 = vadd.f32 %v925_v21, %v899_v50  ;;  %v1172_v21 = vsel %vm65_vm2, %v1153_v19, 0.0  ;;  %v1076_v53 = vsub.f32 %v1036_v2, %v1060_v4  ;;  %v1064_v2 = vld [vmem:[#allocation2 + $0x58] sm:$0xff]  ;;  %v1065_v4 = vld [vmem:[#allocation2 + $0x60] sm:$0xff] }
 0x30f   :  { %v1173_v35 = vadd.f32 %v1172_v21, %v1171_v37 }
 0x310   :  { %963 = vst.msk [vmem:[#allocation4 + $0x48] sm:$0xff] %vm65_vm2, %v947_v25  ;;  %v1140_v32 = vsub.f32 %v1076_v53, %v1116_v17 }
 0x311   :  { %v927_v30 = vpop.xlane.xlu1 %926  ;;  %v1175_v20 = vadd.f32 %v1174_v5, %v1173_v35 }
 0x312   :  { %v948_v26 = vadd.f32 %v927_v30, %v900_v28  ;;  %v854_v44 = vpop.xlane.xlu0 %853  ;;  %v1062_v28 = vld [vmem:[#allocation2 + $0x48] sm:$0xff]  ;;  %v1120_v30 = vmul.f32 0.6931472, %v1519_v33  ;;  %v1156_v1 = vmul.f32 -1.0, %v1140_v32 }
 0x313   :  { %v871_v46 = vadd.f32 %v854_v44, %v823_v60  ;;  %v997_v57 = vld [vmem:[#allocation4 + $0x40] sm:$0xff]  ;;  %v1177_v45 = vadd.f32 %v1176_v61, %v1175_v20  ;;  %v1066_v33 = vld [vmem:[#allocation2 + $0x68] sm:$0xff] }
 0x314   :  { %964 = vst.msk [vmem:[#allocation4 + $0x50] sm:$0xff] %vm65_vm2, %v948_v26  ;;  %v1038_v11 = vmul.f32 %v1507_v24, %v997_v57 }
 0x315   :  { %888 = vst.msk [vmem:[#allocation3 + $0x70] sm:$0xff] %vm65_vm2, %v871_v46  ;;  %v929_v41 = vpop.xlane.xlu1 %928 }
 0x316   :  { %v949_v8 = vadd.f32 %v929_v41, %v901_v36  ;;  %v856_v50 = vpop.xlane.xlu0 %855  ;;  %v1077_v18 = vsub.f32 %v1038_v11, %v1061_v42 }
 0x317   :  { %v872_v43 = vadd.f32 %v856_v50, %v824_v34  ;;  %v998_v51 = vld [vmem:[#allocation4 + $0x48] sm:$0xff] }
 0x318   :  { %965 = vst.msk [vmem:[#allocation4 + $0x58] sm:$0xff] %vm65_vm2, %v949_v8  ;;  %v1040_v0 = vmul.f32 %v1511_v39, %v998_v51  ;;  %v1141_v38 = vsub.f32 %v1077_v18, %v1118_v31  ;;  %v1525_v39 = vpop.eup %1524 }
 0x319   :  { %889 = vst.msk [vmem:[#allocation3 + $0x78] sm:$0xff] %vm65_vm2, %v872_v43  ;;  %v933_v25 = vpop.xlane.xlu1 %932  ;;  %v1527_v7 = vpop.eup %1526 }
 0x31a   :  { %v951_v29 = vadd.f32 %v933_v25, %v903_v12  ;;  %v931_v59 = vpop.xlane.xlu0 %930  ;;  %v1078_v60 = vsub.f32 %v1040_v0, %v1062_v28  ;;  %v1157_v34 = vmul.f32 -1.0, %v1141_v38  ;;  %v1529_v11 = vpop.eup %1528  ;;  %v1124_v50 = vmul.f32 0.6931472, %v1527_v7 }
 0x31b   :  { %v950_v54 = vadd.f32 %v931_v59, %v902_v15  ;;  %v999_v24 = vld [vmem:[#allocation4 + $0x50] sm:$0xff]  ;;  %v1531_v16 = vpop.eup %1530 }
 0x31c   :  { %967 = vst.msk [vmem:[#allocation4 + $0x68] sm:$0xff] %vm65_vm2, %v951_v29  ;;  %v1042_v63 = vmul.f32 %v1517_v56, %v999_v24  ;;  %v1099_v26 = vld [vmem:[#allocation3 + $0x70] sm:$0xff]  ;;  %v1142_v9 = vsub.f32 %v1078_v60, %v1120_v30  ;;  %v1533_v42 = vpop.eup %1532  ;;  %v1178_v56 = vsel %vm65_vm2, %v1156_v1, 0.0  ;;  %v1180_v43 = vsel %vm65_vm2, %v1157_v34, 0.0 }
 0x31d   :  { %966 = vst.msk [vmem:[#allocation4 + $0x60] sm:$0xff] %vm65_vm2, %v950_v54  ;;  %v937_v44 = vpop.xlane.xlu1 %936  ;;  %1538 = vlog2.f32 %v1099_v26  ;;  %v1535_v12 = vpop.eup %1534  ;;  %v1179_v17 = vadd.f32 %v1178_v56, %v1177_v45  ;;  %v1128_v37 = vmul.f32 0.6931472, %v1533_v42  ;;  %v1067_v30 = vld [vmem:[#allocation2 + $0x70] sm:$0xff] }
 0x31e   :  { %v953_v46 = vadd.f32 %v937_v44, %v905_v52  ;;  %v935_v36 = vpop.xlane.xlu0 %934  ;;  %v1079_v57 = vsub.f32 %v1042_v63, %v1063_v58  ;;  %v1158_v6 = vmul.f32 -1.0, %v1142_v9  ;;  %v1537_v0 = vpop.eup %1536  ;;  %v1126_v13 = vmul.f32 0.6931472, %v1535_v12 }
 0x31f   :  { %v952_v3 = vadd.f32 %v935_v36, %v904_v47  ;;  %v1000_v19 = vld [vmem:[#allocation4 + $0x58] sm:$0xff]  ;;  %v1181_v14 = vadd.f32 %v1180_v43, %v1179_v17 }
 0x320   :  { %969 = vst.msk [vmem:[#allocation4 + $0x78] sm:$0xff] %vm65_vm2, %v953_v46  ;;  %v1044_v48 = vmul.f32 %v1523_v40, %v1000_v19  ;;  %v1100_v55 = vld [vmem:[#allocation3 + $0x78] sm:$0xff]  ;;  %v1143_v41 = vsub.f32 %v1079_v57, %v1122_v27  ;;  %v1182_v15 = vsel %vm65_vm2, %v1158_v6, 0.0 }
 0x321   :  { %968 = vst.msk [vmem:[#allocation4 + $0x70] sm:$0xff] %vm65_vm2, %v952_v3  ;;  %1540 = vlog2.f32 %v1100_v55  ;;  %v1183_v35 = vadd.f32 %v1182_v15, %v1181_v14  ;;  %v1068_v40 = vld [vmem:[#allocation2 + $0x78] sm:$0xff] }
 0x322   :  { %v1080_v8 = vsub.f32 %v1044_v48, %v1064_v2  ;;  %v1159_v49 = vmul.f32 -1.0, %v1143_v41 }
 0x323   :  { %v1002_v10 = vld [vmem:[#allocation4 + $0x68] sm:$0xff] }
 0x324   :  { %v1001_v51 = vld [vmem:[#allocation4 + $0x60] sm:$0xff]  ;;  %v1048_v18 = vmul.f32 %v1525_v39, %v1002_v10  ;;  %v1144_v22 = vsub.f32 %v1080_v8, %v1124_v50  ;;  %v1184_v62 = vsel %vm65_vm2, %v1159_v49, 0.0 }
 0x325   :  { %v1046_v21 = vmul.f32 %v1529_v11, %v1001_v51  ;;  %v1185_v32 = vadd.f32 %v1184_v62, %v1183_v35 }
 0x326   :  { %v1082_v31 = vsub.f32 %v1048_v18, %v1066_v33  ;;  %v1160_v25 = vmul.f32 -1.0, %v1144_v22 }
 0x327   :  { %v1004_v28 = vld [vmem:[#allocation4 + $0x78] sm:$0xff]  ;;  %v1081_v53 = vsub.f32 %v1046_v21, %v1065_v4  ;;  %v1539_v23 = vpop.eup %1538 }
 0x328   :  { %v1003_v29 = vld [vmem:[#allocation4 + $0x70] sm:$0xff]  ;;  %v1052_v59 = vmul.f32 %v1531_v16, %v1004_v28  ;;  %v1146_v60 = vsub.f32 %v1082_v31, %v1128_v37  ;;  %v1186_v24 = vsel %vm65_vm2, %v1160_v25, 0.0  ;;  %v1130_v63 = vmul.f32 0.6931472, %v1539_v23 }
 0x329   :  { %v1050_v54 = vmul.f32 %v1537_v0, %v1003_v29  ;;  %v1145_v52 = vsub.f32 %v1081_v53, %v1126_v13  ;;  %v1187_v9 = vadd.f32 %v1186_v24, %v1185_v32 }
 0x32a   :  { %v1162_v44 = vmul.f32 -1.0, %v1146_v60  ;;  %v1084_v58 = vsub.f32 %v1052_v59, %v1068_v40 }
 0x32b   :  { %v1541_v38 = vpop.eup %1540  ;;  %v1083_v47 = vsub.f32 %v1050_v54, %v1067_v30  ;;  %v1161_v26 = vmul.f32 -1.0, %v1145_v52 }
 0x32c   :  { %v1132_v27 = vmul.f32 0.6931472, %v1541_v38  ;;  %v1190_v57 = vsel %vm65_vm2, %v1162_v44, 0.0 }
 0x32d   :  { %v1147_v5 = vsub.f32 %v1083_v47, %v1130_v63  ;;  %v1188_v61 = vsel %vm65_vm2, %v1161_v26, 0.0 }
 0x32e   :  { %v1148_v39 = vsub.f32 %v1084_v58, %v1132_v27  ;;  %v1189_v46 = vadd.f32 %v1188_v61, %v1187_v9 }
 0x32f   :  { %v1163_v36 = vmul.f32 -1.0, %v1147_v5 }
 0x330   :  { %v1164_v20 = vmul.f32 -1.0, %v1148_v39  ;;  %v1191_v7 = vadd.f32 %v1190_v57, %v1189_v46 }
 0x331   :  { %v1192_v3 = vsel %vm65_vm2, %v1163_v36, 0.0 }
 0x332   :  { %v1193_v19 = vadd.f32 %v1192_v3, %v1191_v7  ;;  %v1194_v1 = vsel %vm65_vm2, %v1164_v20, 0.0 }
 0x334   :  { %v1195_v34 = vadd.f32 %v1194_v1, %v1193_v19 }
 0x336   :  { %1196 = vadd.xlane.f32.xlu0 %v1195_v34 }
 0x3c3   :  { %v1197_v11 = vpop.xlane.xlu0 %1196 }
 0x3c4   :  { %v1198_v48 = vrot.slane %v1197_v11, 4 }
 0x3c6   :  { %v1199_v55 = vadd.f32 %v1198_v48, %v1197_v11 }
 0x3c8   :  { %v1200_v41 = vrot.slane %v1199_v55, 2 }
 0x3ca   :  { %v1201_v45 = vadd.f32 %v1200_v41, %v1199_v55 }
 0x3cc   :  { %v1202_v2 = vrot.slane %v1201_v45, 1 }
 0x3ce   :  { %v1203_v6 = vadd.f32 %v1202_v2, %v1201_v45 }
 0x3d0   :  { %1406 = vpush %v1203_v6 }
 0x401   :  { %s1407_s13 = spop %1406 }
 0x402   :  { %v1205_v16 = vstv %s1407_s13 }
 0x403   :  { %1206 = vst [vmem:[#allocation5] sm:$0xff] %v1205_v16 }
 0x404   :  { %1553 = shalt.err (!%p1550_p4)
}
 0x405   :  { %s1554_s17 = scalar_lea.hbm %s2442_s5, 128 }
 0x406   :  { %p1555_p5 = scmp.ne.s32.totalorder %s2442_s5, %s1554_s17  ;;  %p1558_p6 = scmp.lt.u32.totalorder %s1554_s17, %s2442_s5 }
 0x408   :  { %p1560_p7 = pnand %p1558_p6, %p1555_p5 }
 0x40a   :  { %1563 = shalt.err (!%p1560_p7)
}
 0x40b   :  { %1216 = dma.vmem_to_hbm [thread:$0]  %s1214_s12, 128, %s2442_s5, [#allocation6]  }
 0x40c   :  { %1564 = dma.done.wait [#allocation6], 128  }
 0x40d   :  { %1565 = vsyncadd [#allocation6], 4294967168 }
 0x40e   :  { %1220 = vsyncpa [#allocation6], 1 }

</bundles_post_ra>
